<compile_context>
chip_gen: v7x
topology: tpu7x:2x2x1
jax: 0.10.0
libtpu: 0.0.40
codegen_flags: <defaults>
</compile_context>

<pallas_src>
import functools

import jax
import jax.numpy as jnp
import numpy as np
from jax.experimental import pallas as pl
from jax.experimental.pallas import tpu as pltpu


def _round_up(x, m):
    return ((x + m - 1) // m) * m


def _weighted_dist_kernel(
    # inputs
    ctx_ref, w1_ref, b1_ref, w2_ref, b2_ref, w3_ref, b3_ref, w4_ref, b4_ref,
    dist_ref, pkg_ref, proj_ref, mask_ref,
    # outputs
    scores_ref, params_ref,
    # scratch
    params_s, m1_s, s1_s, m2_s, s2_s,
    *, n_actual,
):
    k = pl.program_id(1)
    tn = dist_ref.shape[-1]
    neg_inf = jnp.float32(-jnp.inf)

    # ---- per-B-tile prologue: context MLP + accumulator init (once per B-tile) ----
    @pl.when(k == 0)
    def _():
        ctx = ctx_ref[...].astype(jnp.float32)
        h = jnp.dot(ctx, w1_ref[...], preferred_element_type=jnp.float32) + b1_ref[...]
        h = jnp.maximum(h, 0.0)
        h = jnp.dot(h, w2_ref[...], preferred_element_type=jnp.float32) + b2_ref[...]
        h = jnp.maximum(h, 0.0)
        h = jnp.dot(h, w3_ref[...], preferred_element_type=jnp.float32) + b3_ref[...]
        h = jnp.maximum(h, 0.0)
        params_s[...] = (
            jnp.dot(h, w4_ref[...], preferred_element_type=jnp.float32) + b4_ref[...]
        )
        m1_s[...] = jnp.full(m1_s.shape, neg_inf, jnp.float32)
        s1_s[...] = jnp.zeros(s1_s.shape, jnp.float32)
        m2_s[...] = jnp.full(m2_s.shape, neg_inf, jnp.float32)
        s2_s[...] = jnp.zeros(s2_s.shape, jnp.float32)

    # ---- streaming body: weighted-distance logits + two online logsumexps ----
    dist = dist_ref[...].astype(jnp.float32)
    pkg = pkg_ref[...].astype(jnp.float32)
    proj = proj_ref[...].astype(jnp.float32)
    mask = mask_ref[...].astype(jnp.float32)

    p = params_s[...]  # [TB, 128]; only the first 7 columns are real parameters.
    p0, p1, p2, p3, p4, p5, p6 = (p[:, i:i + 1] for i in range(7))

    ind = proj + 2.0 * pkg
    f0 = (ind == 0.0).astype(jnp.float32)
    f1 = (ind == 1.0).astype(jnp.float32)
    f2 = (ind == 2.0).astype(jnp.float32)
    f3 = (ind == 3.0).astype(jnp.float32)
    logits = (
        f0 * (p0 * dist)
        + f1 * (p1 * dist + p2)
        + f2 * (p3 * dist + p4)
        + f3 * (p5 * dist + p6)
    )

    # Columns that exist only due to wrapper-side N padding contribute nothing.
    col = jax.lax.broadcasted_iota(jnp.int32, logits.shape, 1) + k * tn
    valid = col < n_actual
    x1 = jnp.where(valid, logits, neg_inf)          # denominator: log_softmax
    x2 = jnp.where(valid, logits + mask, neg_inf)   # numerator:   + idx_mask

    def _online_lse(m_ref, s_ref, x):
        m_old = m_ref[...]
        m_new = jnp.maximum(m_old, jnp.max(x, axis=-1, keepdims=True))
        # Clamp only inside the exps so fully-masked tiles stay NaN-free.
        m_safe = jnp.maximum(m_new, jnp.float32(-1e30))
        alpha = jnp.exp(m_old - m_safe)
        s_ref[...] = s_ref[...] * alpha + jnp.sum(
            jnp.exp(x - m_safe), axis=-1, keepdims=True)
        m_ref[...] = m_new

    _online_lse(m1_s, s1_s, x1)
    _online_lse(m2_s, s2_s, x2)

    # ---- epilogue: single write of the small outputs ----
    @pl.when(k == pl.num_programs(1) - 1)
    def _():
        lse1 = m1_s[...] + jnp.log(s1_s[...])
        lse2 = m2_s[...] + jnp.log(s2_s[...])
        scores_ref[...] = lse2 - lse1
        params_ref[...] = params_s[...]


def weighted_dist_forward(context_vec, dist, pkg_l, proj_l, idx_mask, torch_weights,
                          *, block_b=256, block_n=512, interpret=False):
    """torch_weights: list of 4 (W[out,in], b[out]) pairs (nn.Linear layout)."""
    assert len(torch_weights) == 4, "kernel is specialized for nlayers=3 (4 Linear layers)"
    f32 = jnp.float32
    B, C = context_vec.shape
    N = dist.shape[1]
    num_outputs = torch_weights[-1][0].shape[0]

    # Pad all MLP dims to multiples of 128 (zero padding keeps ReLU/matmul exact).
    dims = [C] + [w.shape[0] for (w, _) in torch_weights]     # e.g. [C, 32, 32, 32, 7]
    pdims = [_round_up(d, 128) for d in dims]

    ws, bs = [], []
    for (w, b), din, dout in zip(torch_weights, pdims[:-1], pdims[1:]):
        wt = jnp.asarray(w, f32).T                            # [in, out]
        wpad = jnp.zeros((din, dout), f32).at[: wt.shape[0], : wt.shape[1]].set(wt)
        bpad = jnp.zeros((1, dout), f32).at[0, : b.shape[0]].set(jnp.asarray(b, f32))
        ws.append(wpad)
        bs.append(bpad)

    tb = min(block_b, _round_up(B, 8))
    bp = _round_up(B, tb)
    tn = min(block_n, _round_up(N, 128))
    np_ = _round_up(N, tn)
    cp = pdims[0]
    pp = pdims[-1]

    def _pad2(a, rows, cols):
        a = jnp.asarray(a, f32)
        out = jnp.zeros((rows, cols), f32)
        return out.at[: a.shape[0], : a.shape[1]].set(a)

    ctx_p = _pad2(context_vec, bp, cp)
    dist_p = _pad2(dist, bp, np_)
    pkg_p = _pad2(pkg_l, bp, np_)
    proj_p = _pad2(proj_l, bp, np_)
    mask_p = _pad2(idx_mask, bp, np_)

    const = lambda i, k: (0, 0)
    ctx_spec = pl.BlockSpec((tb, cp), lambda i, k: (i, 0))
    cand_spec = pl.BlockSpec((tb, tn), lambda i, k: (i, k))
    wb_specs = []
    for w, b in zip(ws, bs):
        wb_specs.append(pl.BlockSpec(w.shape, const))
        wb_specs.append(pl.BlockSpec(b.shape, const))
    in_specs = [ctx_spec] + wb_specs + [cand_spec] * 4

    out_specs = (
        pl.BlockSpec((tb, 1), lambda i, k: (i, 0)),
        pl.BlockSpec((tb, pp), lambda i, k: (i, 0)),
    )
    out_shape = (
        jax.ShapeDtypeStruct((bp, 1), f32),
        jax.ShapeDtypeStruct((bp, pp), f32),
    )
    scratch_shapes = [
        pltpu.VMEM((tb, pp), f32),   # params accumulator (padded)
        pltpu.VMEM((tb, 1), f32),    # m1 (log_softmax denom)
        pltpu.VMEM((tb, 1), f32),    # s1
        pltpu.VMEM((tb, 1), f32),    # m2 (+ idx_mask numerator)
        pltpu.VMEM((tb, 1), f32),    # s2
    ]

    kernel = functools.partial(_weighted_dist_kernel, n_actual=N)
    fn = pl.pallas_call(
        kernel,
        out_shape=out_shape,
        grid_spec=pltpu.PrefetchScalarGridSpec(
            num_scalar_prefetch=0,
            grid=(bp // tb, np_ // tn),
            in_specs=in_specs,
            out_specs=out_specs,
            scratch_shapes=scratch_shapes,
        ),
        compiler_params=pltpu.CompilerParams(
            dimension_semantics=("parallel", "arbitrary"),
            vmem_limit_bytes=64 * 1024 * 1024,
        ),
        interpret=interpret,
    )

    args = [ctx_p]
    for w, b in zip(ws, bs):
        args += [w, b]
    args += [dist_p, pkg_p, proj_p, mask_p]
    scores_p, params_p = fn(*args)
    return scores_p[:B, 0], params_p[:B, :num_outputs]


def _reference_forward(context_vec, dist, pkg_l, proj_l, idx_mask, torch_weights):
    """Pure-JAX port of WeightedDist.forward (dropout p=0)."""
    hi = jax.lax.Precision.HIGHEST
    x = jnp.asarray(context_vec, jnp.float32)
    for w, b in torch_weights[:-1]:
        x = jnp.maximum(jnp.dot(x, jnp.asarray(w).T, precision=hi) + jnp.asarray(b), 0.0)
    w, b = torch_weights[-1]
    params = jnp.dot(x, jnp.asarray(w).T, precision=hi) + jnp.asarray(b)

    ind = (proj_l + 2.0 * pkg_l).astype(jnp.int32)
    lf = jax.nn.one_hot(ind, 4, axis=0, dtype=jnp.float32)     # [4, B, N]
    logits = (
        lf[0] * (params[:, 0:1] * dist)
        + lf[1] * (params[:, 1:2] * dist + params[:, 2:3])
        + lf[2] * (params[:, 3:4] * dist + params[:, 4:5])
        + lf[3] * (params[:, 5:6] * dist + params[:, 6:7])
    )
    probs = jax.nn.log_softmax(logits, axis=-1)
    scores = jax.scipy.special.logsumexp(probs + idx_mask, axis=-1)
    return scores, params


if __name__ == "__main__":
    key = jax.random.PRNGKey(0)
    B, C, N = 10, 256, 1000                 # small shapes; N not a multiple of 128
    hidden, nlayers, num_outputs = 32, 3, 7

    ks = jax.random.split(key, 16)
    context_vec = jax.random.normal(ks[0], (B, C), jnp.float32)
    dist = jax.random.uniform(ks[1], (B, N), jnp.float32, 0.0, 5.0)
    pkg_l = jax.random.randint(ks[2], (B, N), 0, 2).astype(jnp.float32)
    proj_l = jax.random.randint(ks[3], (B, N), 0, 2).astype(jnp.float32)
    idx_mask = jnp.where(jax.random.uniform(ks[4], (B, N)) < 0.25,
                         -jnp.inf, 0.0).astype(jnp.float32)

    # nn.Linear-style weights (W: [out, in], b: [out]) for
    # WeightedDist(hidden_units=32, nlayers=3, activation='relu', context_dim=C).
    dims = [C] + [hidden] * nlayers + [num_outputs]
    weights = []
    for li, (din, dout) in enumerate(zip(dims[:-1], dims[1:])):
        wk, bk = jax.random.split(ks[5 + li])
        bound = 1.0 / np.sqrt(din)
        weights.append((
            jax.random.uniform(wk, (dout, din), jnp.float32, -bound, bound),
            jax.random.uniform(bk, (dout,), jnp.float32, -bound, bound),
        ))

    scores, params = weighted_dist_forward(
        context_vec, dist, pkg_l, proj_l, idx_mask, weights)
    scores, params = jax.block_until_ready((scores, params))

    ref_scores, ref_params = _reference_forward(
        context_vec, dist, pkg_l, proj_l, idx_mask, weights)
    ref_scores, ref_params = jax.block_until_ready((ref_scores, ref_params))

    assert np.allclose(np.asarray(params), np.asarray(ref_params),
                       rtol=2e-3, atol=2e-3), "params mismatch"
    assert np.allclose(np.asarray(scores), np.asarray(ref_scores),
                       rtol=2e-3, atol=2e-3), "scores mismatch"
    print("KERNEL_OK")
</pallas_src>

<mosaic_0001>
module attributes {stable_mosaic.version = 11 : i64} {
  func.func @_weighted_dist_kernel(%arg0: i32, %arg1: i32, %arg2: memref<16x256xf32, #tpu.memory_space<vmem>>, %arg3: memref<256x128xf32, #tpu.memory_space<vmem>>, %arg4: memref<1x128xf32, #tpu.memory_space<vmem>>, %arg5: memref<128x128xf32, #tpu.memory_space<vmem>>, %arg6: memref<1x128xf32, #tpu.memory_space<vmem>>, %arg7: memref<128x128xf32, #tpu.memory_space<vmem>>, %arg8: memref<1x128xf32, #tpu.memory_space<vmem>>, %arg9: memref<128x128xf32, #tpu.memory_space<vmem>>, %arg10: memref<1x128xf32, #tpu.memory_space<vmem>>, %arg11: memref<16x512xf32, #tpu.memory_space<vmem>>, %arg12: memref<16x512xf32, #tpu.memory_space<vmem>>, %arg13: memref<16x512xf32, #tpu.memory_space<vmem>>, %arg14: memref<16x512xf32, #tpu.memory_space<vmem>>, %arg15: memref<16x1xf32, #tpu.memory_space<vmem>>, %arg16: memref<16x128xf32, #tpu.memory_space<vmem>>, %arg17: memref<16x128xf32, #tpu.memory_space<vmem>>, %arg18: memref<16x1xf32, #tpu.memory_space<vmem>>, %arg19: memref<16x1xf32, #tpu.memory_space<vmem>>, %arg20: memref<16x1xf32, #tpu.memory_space<vmem>>, %arg21: memref<16x1xf32, #tpu.memory_space<vmem>>) attributes {dimension_semantics = [#tpu.dimension_semantics<parallel>, #tpu.dimension_semantics<arbitrary>], iteration_bounds = array<i64: 1, 2>, scalar_prefetch = 0 : i64, scratch_operands = 5 : i64, tpu.core_type = #tpu.core_type<tc>, window_params = [{transform_indices = @transform_0, window_bounds = array<i64: 16, 256>}, {pipeline_mode = #tpu.pipeline_mode<synchronous>, transform_indices = @transform_1, window_bounds = array<i64: 256, 128>}, {pipeline_mode = #tpu.pipeline_mode<synchronous>, transform_indices = @transform_2, window_bounds = array<i64: 1, 128>}, {pipeline_mode = #tpu.pipeline_mode<synchronous>, transform_indices = @transform_3, window_bounds = array<i64: 128, 128>}, {pipeline_mode = #tpu.pipeline_mode<synchronous>, transform_indices = @transform_4, window_bounds = array<i64: 1, 128>}, {pipeline_mode = #tpu.pipeline_mode<synchronous>, transform_indices = @transform_5, window_bounds = array<i64: 128, 128>}, {pipeline_mode = #tpu.pipeline_mode<synchronous>, transform_indices = @transform_6, window_bounds = array<i64: 1, 128>}, {pipeline_mode = #tpu.pipeline_mode<synchronous>, transform_indices = @transform_7, window_bounds = array<i64: 128, 128>}, {pipeline_mode = #tpu.pipeline_mode<synchronous>, transform_indices = @transform_8, window_bounds = array<i64: 1, 128>}, {transform_indices = @transform_9, window_bounds = array<i64: 16, 512>}, {transform_indices = @transform_10, window_bounds = array<i64: 16, 512>}, {transform_indices = @transform_11, window_bounds = array<i64: 16, 512>}, {transform_indices = @transform_12, window_bounds = array<i64: 16, 512>}, {transform_indices = @transform_13, window_bounds = array<i64: 16, 1>}, {transform_indices = @transform_14, window_bounds = array<i64: 16, 128>}]} {
    %c0_i32 = arith.constant 0 : i32
    %0 = arith.cmpi eq, %arg1, %c0_i32 : i32
    %1 = arith.extui %0 : i1 to i32
    %cst = arith.constant 0xFF800000 : f32
    %c0_i32_0 = arith.constant 0 : i32
    %2 = arith.cmpi ne, %1, %c0_i32_0 : i32
    scf.if %2 {
      %c0_40 = arith.constant 0 : index
      %c0_41 = arith.constant 0 : index
      %105 = vector.load %arg2[%c0_40, %c0_41] : memref<16x256xf32, #tpu.memory_space<vmem>>, vector<16x256xf32>
      %c0_42 = arith.constant 0 : index
      %c0_43 = arith.constant 0 : index
      %106 = vector.load %arg3[%c0_42, %c0_43] : memref<256x128xf32, #tpu.memory_space<vmem>>, vector<256x128xf32>
      %cst_44 = arith.constant dense<0.000000e+00> : vector<16x128xf32>
      %107 = tpu.matmul %105, %106, %cst_44 {dimension_numbers = #tpu.dot_dimension_numbers<[1], [0], [0], [1], [0, 0, 1, 1], [], []>} : vector<16x256xf32>, vector<256x128xf32>, vector<16x128xf32> -> vector<16x128xf32>
      %c0_45 = arith.constant 0 : index
      %c0_46 = arith.constant 0 : index
      %108 = vector.load %arg4[%c0_45, %c0_46] : memref<1x128xf32, #tpu.memory_space<vmem>>, vector<1x128xf32>
      %109 = vector.broadcast %108 : vector<1x128xf32> to vector<16x128xf32>
      %110 = arith.addf %107, %109 : vector<16x128xf32>
      %cst_47 = arith.constant 0.000000e+00 : f32
      %111 = vector.broadcast %cst_47 : f32 to vector<16x128xf32>
      %112 = arith.maximumf %110, %111 : vector<16x128xf32>
      %c0_48 = arith.constant 0 : index
      %c0_49 = arith.constant 0 : index
      %113 = vector.load %arg5[%c0_48, %c0_49] : memref<128x128xf32, #tpu.memory_space<vmem>>, vector<128x128xf32>
      %cst_50 = arith.constant dense<0.000000e+00> : vector<16x128xf32>
      %114 = tpu.matmul %112, %113, %cst_50 {dimension_numbers = #tpu.dot_dimension_numbers<[1], [0], [0], [1], [0, 0, 1, 1], [], []>} : vector<16x128xf32>, vector<128x128xf32>, vector<16x128xf32> -> vector<16x128xf32>
      %c0_51 = arith.constant 0 : index
      %c0_52 = arith.constant 0 : index
      %115 = vector.load %arg6[%c0_51, %c0_52] : memref<1x128xf32, #tpu.memory_space<vmem>>, vector<1x128xf32>
      %116 = vector.broadcast %115 : vector<1x128xf32> to vector<16x128xf32>
      %117 = arith.addf %114, %116 : vector<16x128xf32>
      %cst_53 = arith.constant 0.000000e+00 : f32
      %118 = vector.broadcast %cst_53 : f32 to vector<16x128xf32>
      %119 = arith.maximumf %117, %118 : vector<16x128xf32>
      %c0_54 = arith.constant 0 : index
      %c0_55 = arith.constant 0 : index
      %120 = vector.load %arg7[%c0_54, %c0_55] : memref<128x128xf32, #tpu.memory_space<vmem>>, vector<128x128xf32>
      %cst_56 = arith.constant dense<0.000000e+00> : vector<16x128xf32>
      %121 = tpu.matmul %119, %120, %cst_56 {dimension_numbers = #tpu.dot_dimension_numbers<[1], [0], [0], [1], [0, 0, 1, 1], [], []>} : vector<16x128xf32>, vector<128x128xf32>, vector<16x128xf32> -> vector<16x128xf32>
      %c0_57 = arith.constant 0 : index
      %c0_58 = arith.constant 0 : index
      %122 = vector.load %arg8[%c0_57, %c0_58] : memref<1x128xf32, #tpu.memory_space<vmem>>, vector<1x128xf32>
      %123 = vector.broadcast %122 : vector<1x128xf32> to vector<16x128xf32>
      %124 = arith.addf %121, %123 : vector<16x128xf32>
      %cst_59 = arith.constant 0.000000e+00 : f32
      %125 = vector.broadcast %cst_59 : f32 to vector<16x128xf32>
      %126 = arith.maximumf %124, %125 : vector<16x128xf32>
      %c0_60 = arith.constant 0 : index
      %c0_61 = arith.constant 0 : index
      %127 = vector.load %arg9[%c0_60, %c0_61] : memref<128x128xf32, #tpu.memory_space<vmem>>, vector<128x128xf32>
      %cst_62 = arith.constant dense<0.000000e+00> : vector<16x128xf32>
      %128 = tpu.matmul %126, %127, %cst_62 {dimension_numbers = #tpu.dot_dimension_numbers<[1], [0], [0], [1], [0, 0, 1, 1], [], []>} : vector<16x128xf32>, vector<128x128xf32>, vector<16x128xf32> -> vector<16x128xf32>
      %c0_63 = arith.constant 0 : index
      %c0_64 = arith.constant 0 : index
      %129 = vector.load %arg10[%c0_63, %c0_64] : memref<1x128xf32, #tpu.memory_space<vmem>>, vector<1x128xf32>
      %130 = vector.broadcast %129 : vector<1x128xf32> to vector<16x128xf32>
      %131 = arith.addf %128, %130 : vector<16x128xf32>
      %c0_65 = arith.constant 0 : index
      %c0_66 = arith.constant 0 : index
      %132 = vector.load %arg17[%c0_65, %c0_66] : memref<16x128xf32, #tpu.memory_space<vmem>>, vector<16x128xf32>
      tpu.vector_store %arg17[%c0_65, %c0_66], %131 {strides = array<i32>} : memref<16x128xf32, #tpu.memory_space<vmem>>, vector<16x128xf32>,
      %133 = vector.broadcast %cst : f32 to vector<16x1xf32>
      %c0_67 = arith.constant 0 : index
      %c0_68 = arith.constant 0 : index
      %134 = vector.load %arg18[%c0_67, %c0_68] : memref<16x1xf32, #tpu.memory_space<vmem>>, vector<16x1xf32>
      tpu.vector_store %arg18[%c0_67, %c0_68], %133 {strides = array<i32>} : memref<16x1xf32, #tpu.memory_space<vmem>>, vector<16x1xf32>,
      %cst_69 = arith.constant 0.000000e+00 : f32
      %135 = vector.broadcast %cst_69 : f32 to vector<16x1xf32>
      %c0_70 = arith.constant 0 : index
      %c0_71 = arith.constant 0 : index
      %136 = vector.load %arg19[%c0_70, %c0_71] : memref<16x1xf32, #tpu.memory_space<vmem>>, vector<16x1xf32>
      tpu.vector_store %arg19[%c0_70, %c0_71], %135 {strides = array<i32>} : memref<16x1xf32, #tpu.memory_space<vmem>>, vector<16x1xf32>,
      %137 = vector.broadcast %cst : f32 to vector<16x1xf32>
      %c0_72 = arith.constant 0 : index
      %c0_73 = arith.constant 0 : index
      %138 = vector.load %arg20[%c0_72, %c0_73] : memref<16x1xf32, #tpu.memory_space<vmem>>, vector<16x1xf32>
      tpu.vector_store %arg20[%c0_72, %c0_73], %137 {strides = array<i32>} : memref<16x1xf32, #tpu.memory_space<vmem>>, vector<16x1xf32>,
      %cst_74 = arith.constant 0.000000e+00 : f32
      %139 = vector.broadcast %cst_74 : f32 to vector<16x1xf32>
      %c0_75 = arith.constant 0 : index
      %c0_76 = arith.constant 0 : index
      %140 = vector.load %arg21[%c0_75, %c0_76] : memref<16x1xf32, #tpu.memory_space<vmem>>, vector<16x1xf32>
      tpu.vector_store %arg21[%c0_75, %c0_76], %139 {strides = array<i32>} : memref<16x1xf32, #tpu.memory_space<vmem>>, vector<16x1xf32>,
    } else {
    }
    %c0 = arith.constant 0 : index
    %c0_1 = arith.constant 0 : index
    %3 = vector.load %arg11[%c0, %c0_1] : memref<16x512xf32, #tpu.memory_space<vmem>>, vector<16x512xf32>
    %c0_2 = arith.constant 0 : index
    %c0_3 = arith.constant 0 : index
    %4 = vector.load %arg12[%c0_2, %c0_3] : memref<16x512xf32, #tpu.memory_space<vmem>>, vector<16x512xf32>
    %c0_4 = arith.constant 0 : index
    %c0_5 = arith.constant 0 : index
    %5 = vector.load %arg13[%c0_4, %c0_5] : memref<16x512xf32, #tpu.memory_space<vmem>>, vector<16x512xf32>
    %c0_6 = arith.constant 0 : index
    %c0_7 = arith.constant 0 : index
    %6 = vector.load %arg14[%c0_6, %c0_7] : memref<16x512xf32, #tpu.memory_space<vmem>>, vector<16x512xf32>
    %c0_8 = arith.constant 0 : index
    %c0_9 = arith.constant 0 : index
    %7 = vector.load %arg17[%c0_8, %c0_9] : memref<16x128xf32, #tpu.memory_space<vmem>>, vector<16x128xf32>
    %8 = vector.extract_strided_slice %7 {offsets = [0, 0], sizes = [16, 1], strides = [1, 1]} : vector<16x128xf32> to vector<16x1xf32>
    %9 = vector.extract_strided_slice %7 {offsets = [0, 1], sizes = [16, 1], strides = [1, 1]} : vector<16x128xf32> to vector<16x1xf32>
    %10 = vector.extract_strided_slice %7 {offsets = [0, 2], sizes = [16, 1], strides = [1, 1]} : vector<16x128xf32> to vector<16x1xf32>
    %11 = vector.extract_strided_slice %7 {offsets = [0, 3], sizes = [16, 1], strides = [1, 1]} : vector<16x128xf32> to vector<16x1xf32>
    %12 = vector.extract_strided_slice %7 {offsets = [0, 4], sizes = [16, 1], strides = [1, 1]} : vector<16x128xf32> to vector<16x1xf32>
    %13 = vector.extract_strided_slice %7 {offsets = [0, 5], sizes = [16, 1], strides = [1, 1]} : vector<16x128xf32> to vector<16x1xf32>
    %14 = vector.extract_strided_slice %7 {offsets = [0, 6], sizes = [16, 1], strides = [1, 1]} : vector<16x128xf32> to vector<16x1xf32>
    %cst_10 = arith.constant 2.000000e+00 : f32
    %15 = vector.broadcast %cst_10 : f32 to vector<16x512xf32>
    %16 = arith.mulf %15, %4 : vector<16x512xf32>
    %17 = arith.addf %5, %16 : vector<16x512xf32>
    %cst_11 = arith.constant 0.000000e+00 : f32
    %18 = vector.broadcast %cst_11 : f32 to vector<16x512xf32>
    %19 = arith.cmpf oeq, %17, %18 : vector<16x512xf32>
    %20 = arith.extui %19 : vector<16x512xi1> to vector<16x512xi32>
    %21 = arith.sitofp %20 : vector<16x512xi32> to vector<16x512xf32>
    %cst_12 = arith.constant 1.000000e+00 : f32
    %22 = vector.broadcast %cst_12 : f32 to vector<16x512xf32>
    %23 = arith.cmpf oeq, %17, %22 : vector<16x512xf32>
    %24 = arith.extui %23 : vector<16x512xi1> to vector<16x512xi32>
    %25 = arith.sitofp %24 : vector<16x512xi32> to vector<16x512xf32>
    %cst_13 = arith.constant 2.000000e+00 : f32
    %26 = vector.broadcast %cst_13 : f32 to vector<16x512xf32>
    %27 = arith.cmpf oeq, %17, %26 : vector<16x512xf32>
    %28 = arith.extui %27 : vector<16x512xi1> to vector<16x512xi32>
    %29 = arith.sitofp %28 : vector<16x512xi32> to vector<16x512xf32>
    %cst_14 = arith.constant 3.000000e+00 : f32
    %30 = vector.broadcast %cst_14 : f32 to vector<16x512xf32>
    %31 = arith.cmpf oeq, %17, %30 : vector<16x512xf32>
    %32 = arith.extui %31 : vector<16x512xi1> to vector<16x512xi32>
    %33 = arith.sitofp %32 : vector<16x512xi32> to vector<16x512xf32>
    %34 = vector.broadcast %8 : vector<16x1xf32> to vector<16x512xf32>
    %35 = arith.mulf %34, %3 : vector<16x512xf32>
    %36 = arith.mulf %21, %35 : vector<16x512xf32>
    %37 = vector.broadcast %9 : vector<16x1xf32> to vector<16x512xf32>
    %38 = arith.mulf %37, %3 : vector<16x512xf32>
    %39 = vector.broadcast %10 : vector<16x1xf32> to vector<16x512xf32>
    %40 = arith.addf %38, %39 : vector<16x512xf32>
    %41 = arith.mulf %25, %40 : vector<16x512xf32>
    %42 = arith.addf %36, %41 : vector<16x512xf32>
    %43 = vector.broadcast %11 : vector<16x1xf32> to vector<16x512xf32>
    %44 = arith.mulf %43, %3 : vector<16x512xf32>
    %45 = vector.broadcast %12 : vector<16x1xf32> to vector<16x512xf32>
    %46 = arith.addf %44, %45 : vector<16x512xf32>
    %47 = arith.mulf %29, %46 : vector<16x512xf32>
    %48 = arith.addf %42, %47 : vector<16x512xf32>
    %49 = vector.broadcast %13 : vector<16x1xf32> to vector<16x512xf32>
    %50 = arith.mulf %49, %3 : vector<16x512xf32>
    %51 = vector.broadcast %14 : vector<16x1xf32> to vector<16x512xf32>
    %52 = arith.addf %50, %51 : vector<16x512xf32>
    %53 = arith.mulf %33, %52 : vector<16x512xf32>
    %54 = arith.addf %48, %53 : vector<16x512xf32>
    %55 = tpu.iota {dimensions = array<i32: 1>} : vector<16x512xi32>
    %c512_i32 = arith.constant 512 : i32
    %56 = arith.muli %arg1, %c512_i32 : i32
    %57 = vector.broadcast %56 : i32 to vector<16x512xi32>
    %58 = arith.addi %55, %57 : vector<16x512xi32>
    %c1000_i32 = arith.constant 1000 : i32
    %59 = vector.broadcast %c1000_i32 : i32 to vector<16x512xi32>
    %60 = arith.cmpi slt, %58, %59 : vector<16x512xi32>
    %cst_15 = arith.constant 0xFF800000 : f32
    %61 = vector.broadcast %cst_15 : f32 to vector<16x512xf32>
    %62 = arith.select %60, %54, %61 : vector<16x512xi1>, vector<16x512xf32>
    %63 = arith.addf %54, %6 : vector<16x512xf32>
    %cst_16 = arith.constant 0xFF800000 : f32
    %64 = vector.broadcast %cst_16 : f32 to vector<16x512xf32>
    %65 = arith.select %60, %63, %64 : vector<16x512xi1>, vector<16x512xf32>
    %c0_17 = arith.constant 0 : index
    %c0_18 = arith.constant 0 : index
    %66 = vector.load %arg18[%c0_17, %c0_18] : memref<16x1xf32, #tpu.memory_space<vmem>>, vector<16x1xf32>
    %cst_19 = arith.constant dense<0xFF800000> : vector<16xf32>
    %67 = vector.multi_reduction <maximumf>, %62, %cst_19 [1] : vector<16x512xf32> to vector<16xf32>
    %68 = vector.shape_cast %67 : vector<16xf32> to vector<16x1xf32>
    %69 = arith.maximumf %66, %68 : vector<16x1xf32>
    %cst_20 = arith.constant -1.000000e+30 : f32
    %70 = vector.broadcast %cst_20 : f32 to vector<16x1xf32>
    %71 = arith.maximumf %69, %70 : vector<16x1xf32>
    %72 = arith.subf %66, %71 : vector<16x1xf32>
    %73 = math.exp %72 : vector<16x1xf32>
    %c0_21 = arith.constant 0 : index
    %c0_22 = arith.constant 0 : index
    %74 = vector.load %arg19[%c0_21, %c0_22] : memref<16x1xf32, #tpu.memory_space<vmem>>, vector<16x1xf32>
    %75 = arith.mulf %74, %73 : vector<16x1xf32>
    %76 = vector.broadcast %71 : vector<16x1xf32> to vector<16x512xf32>
    %77 = arith.subf %62, %76 : vector<16x512xf32>
    %78 = math.exp %77 : vector<16x512xf32>
    %cst_23 = arith.constant dense<0.000000e+00> : vector<16xf32>
    %79 = vector.multi_reduction <add>, %78, %cst_23 [1] : vector<16x512xf32> to vector<16xf32>
    %80 = vector.shape_cast %79 : vector<16xf32> to vector<16x1xf32>
    %81 = arith.addf %75, %80 : vector<16x1xf32>
    %c0_24 = arith.constant 0 : index
    %c0_25 = arith.constant 0 : index
    %82 = vector.load %arg19[%c0_24, %c0_25] : memref<16x1xf32, #tpu.memory_space<vmem>>, vector<16x1xf32>
    tpu.vector_store %arg19[%c0_24, %c0_25], %81 {strides = array<i32>} : memref<16x1xf32, #tpu.memory_space<vmem>>, vector<16x1xf32>,
    %c0_26 = arith.constant 0 : index
    %c0_27 = arith.constant 0 : index
    %83 = vector.load %arg18[%c0_26, %c0_27] : memref<16x1xf32, #tpu.memory_space<vmem>>, vector<16x1xf32>
    tpu.vector_store %arg18[%c0_26, %c0_27], %69 {strides = array<i32>} : memref<16x1xf32, #tpu.memory_space<vmem>>, vector<16x1xf32>,
    %c0_28 = arith.constant 0 : index
    %c0_29 = arith.constant 0 : index
    %84 = vector.load %arg20[%c0_28, %c0_29] : memref<16x1xf32, #tpu.memory_space<vmem>>, vector<16x1xf32>
    %cst_30 = arith.constant dense<0xFF800000> : vector<16xf32>
    %85 = vector.multi_reduction <maximumf>, %65, %cst_30 [1] : vector<16x512xf32> to vector<16xf32>
    %86 = vector.shape_cast %85 : vector<16xf32> to vector<16x1xf32>
    %87 = arith.maximumf %84, %86 : vector<16x1xf32>
    %cst_31 = arith.constant -1.000000e+30 : f32
    %88 = vector.broadcast %cst_31 : f32 to vector<16x1xf32>
    %89 = arith.maximumf %87, %88 : vector<16x1xf32>
    %90 = arith.subf %84, %89 : vector<16x1xf32>
    %91 = math.exp %90 : vector<16x1xf32>
    %c0_32 = arith.constant 0 : index
    %c0_33 = arith.constant 0 : index
    %92 = vector.load %arg21[%c0_32, %c0_33] : memref<16x1xf32, #tpu.memory_space<vmem>>, vector<16x1xf32>
    %93 = arith.mulf %92, %91 : vector<16x1xf32>
    %94 = vector.broadcast %89 : vector<16x1xf32> to vector<16x512xf32>
    %95 = arith.subf %65, %94 : vector<16x512xf32>
    %96 = math.exp %95 : vector<16x512xf32>
    %cst_34 = arith.constant dense<0.000000e+00> : vector<16xf32>
    %97 = vector.multi_reduction <add>, %96, %cst_34 [1] : vector<16x512xf32> to vector<16xf32>
    %98 = vector.shape_cast %97 : vector<16xf32> to vector<16x1xf32>
    %99 = arith.addf %93, %98 : vector<16x1xf32>
    %c0_35 = arith.constant 0 : index
    %c0_36 = arith.constant 0 : index
    %100 = vector.load %arg21[%c0_35, %c0_36] : memref<16x1xf32, #tpu.memory_space<vmem>>, vector<16x1xf32>
    tpu.vector_store %arg21[%c0_35, %c0_36], %99 {strides = array<i32>} : memref<16x1xf32, #tpu.memory_space<vmem>>, vector<16x1xf32>,
    %c0_37 = arith.constant 0 : index
    %c0_38 = arith.constant 0 : index
    %101 = vector.load %arg20[%c0_37, %c0_38] : memref<16x1xf32, #tpu.memory_space<vmem>>, vector<16x1xf32>
    tpu.vector_store %arg20[%c0_37, %c0_38], %87 {strides = array<i32>} : memref<16x1xf32, #tpu.memory_space<vmem>>, vector<16x1xf32>,
    %c1_i32 = arith.constant 1 : i32
    %102 = arith.cmpi eq, %arg1, %c1_i32 : i32
    %103 = arith.extui %102 : i1 to i32
    %c0_i32_39 = arith.constant 0 : i32
    %104 = arith.cmpi ne, %103, %c0_i32_39 : i32
    scf.if %104 {
      %c0_40 = arith.constant 0 : index
      %c0_41 = arith.constant 0 : index
      %105 = vector.load %arg18[%c0_40, %c0_41] : memref<16x1xf32, #tpu.memory_space<vmem>>, vector<16x1xf32>
      %c0_42 = arith.constant 0 : index
      %c0_43 = arith.constant 0 : index
      %106 = vector.load %arg19[%c0_42, %c0_43] : memref<16x1xf32, #tpu.memory_space<vmem>>, vector<16x1xf32>
      %107 = math.log %106 : vector<16x1xf32>
      %108 = arith.addf %105, %107 : vector<16x1xf32>
      %c0_44 = arith.constant 0 : index
      %c0_45 = arith.constant 0 : index
      %109 = vector.load %arg20[%c0_44, %c0_45] : memref<16x1xf32, #tpu.memory_space<vmem>>, vector<16x1xf32>
      %c0_46 = arith.constant 0 : index
      %c0_47 = arith.constant 0 : index
      %110 = vector.load %arg21[%c0_46, %c0_47] : memref<16x1xf32, #tpu.memory_space<vmem>>, vector<16x1xf32>
      %111 = math.log %110 : vector<16x1xf32>
      %112 = arith.addf %109, %111 : vector<16x1xf32>
      %113 = arith.subf %112, %108 : vector<16x1xf32>
      %c0_48 = arith.constant 0 : index
      %c0_49 = arith.constant 0 : index
      %114 = vector.load %arg15[%c0_48, %c0_49] : memref<16x1xf32, #tpu.memory_space<vmem>>, vector<16x1xf32>
      tpu.vector_store %arg15[%c0_48, %c0_49], %113 {strides = array<i32>} : memref<16x1xf32, #tpu.memory_space<vmem>>, vector<16x1xf32>,
      %c0_50 = arith.constant 0 : index
      %c0_51 = arith.constant 0 : index
      %115 = vector.load %arg17[%c0_50, %c0_51] : memref<16x128xf32, #tpu.memory_space<vmem>>, vector<16x128xf32>
      %c0_52 = arith.constant 0 : index
      %c0_53 = arith.constant 0 : index
      %116 = vector.load %arg16[%c0_52, %c0_53] : memref<16x128xf32, #tpu.memory_space<vmem>>, vector<16x128xf32>
      tpu.vector_store %arg16[%c0_52, %c0_53], %115 {strides = array<i32>} : memref<16x128xf32, #tpu.memory_space<vmem>>, vector<16x128xf32>,
    } else {
    }
    return
  }
  func.func @transform_0(%arg0: i32, %arg1: i32) -> (i32, i32) {
    %c0_i32 = arith.constant 0 : i32
    %c0_i32_0 = arith.constant 0 : i32
    return %arg0, %c0_i32 : i32, i32
  }
  func.func @transform_1(%arg0: i32, %arg1: i32) -> (i32, i32) {
    %c0_i32 = arith.constant 0 : i32
    %c0_i32_0 = arith.constant 0 : i32
    %c0_i32_1 = arith.constant 0 : i32
    return %c0_i32, %c0_i32_0 : i32, i32
  }
  func.func @transform_2(%arg0: i32, %arg1: i32) -> (i32, i32) {
    %c0_i32 = arith.constant 0 : i32
    %c0_i32_0 = arith.constant 0 : i32
    %c0_i32_1 = arith.constant 0 : i32
    return %c0_i32, %c0_i32_0 : i32, i32
  }
  func.func @transform_3(%arg0: i32, %arg1: i32) -> (i32, i32) {
    %c0_i32 = arith.constant 0 : i32
    %c0_i32_0 = arith.constant 0 : i32
    %c0_i32_1 = arith.constant 0 : i32
    return %c0_i32, %c0_i32_0 : i32, i32
  }
  func.func @transform_4(%arg0: i32, %arg1: i32) -> (i32, i32) {
    %c0_i32 = arith.constant 0 : i32
    %c0_i32_0 = arith.constant 0 : i32
    %c0_i32_1 = arith.constant 0 : i32
    return %c0_i32, %c0_i32_0 : i32, i32
  }
  func.func @transform_5(%arg0: i32, %arg1: i32) -> (i32, i32) {
    %c0_i32 = arith.constant 0 : i32
    %c0_i32_0 = arith.constant 0 : i32
    %c0_i32_1 = arith.constant 0 : i32
    return %c0_i32, %c0_i32_0 : i32, i32
  }
  func.func @transform_6(%arg0: i32, %arg1: i32) -> (i32, i32) {
    %c0_i32 = arith.constant 0 : i32
    %c0_i32_0 = arith.constant 0 : i32
    %c0_i32_1 = arith.constant 0 : i32
    return %c0_i32, %c0_i32_0 : i32, i32
  }
  func.func @transform_7(%arg0: i32, %arg1: i32) -> (i32, i32) {
    %c0_i32 = arith.constant 0 : i32
    %c0_i32_0 = arith.constant 0 : i32
    %c0_i32_1 = arith.constant 0 : i32
    return %c0_i32, %c0_i32_0 : i32, i32
  }
  func.func @transform_8(%arg0: i32, %arg1: i32) -> (i32, i32) {
    %c0_i32 = arith.constant 0 : i32
    %c0_i32_0 = arith.constant 0 : i32
    %c0_i32_1 = arith.constant 0 : i32
    return %c0_i32, %c0_i32_0 : i32, i32
  }
  func.func @transform_9(%arg0: i32, %arg1: i32) -> (i32, i32) {
    %c0_i32 = arith.constant 0 : i32
    return %arg0, %arg1 : i32, i32
  }
  func.func @transform_10(%arg0: i32, %arg1: i32) -> (i32, i32) {
    %c0_i32 = arith.constant 0 : i32
    return %arg0, %arg1 : i32, i32
  }
  func.func @transform_11(%arg0: i32, %arg1: i32) -> (i32, i32) {
    %c0_i32 = arith.constant 0 : i32
    return %arg0, %arg1 : i32, i32
  }
  func.func @transform_12(%arg0: i32, %arg1: i32) -> (i32, i32) {
    %c0_i32 = arith.constant 0 : i32
    return %arg0, %arg1 : i32, i32
  }
  func.func @transform_13(%arg0: i32, %arg1: i32) -> (i32, i32) {
    %c0_i32 = arith.constant 0 : i32
    %c0_i32_0 = arith.constant 0 : i32
    return %arg0, %c0_i32 : i32, i32
  }
  func.func @transform_14(%arg0: i32, %arg1: i32) -> (i32, i32) {
    %c0_i32 = arith.constant 0 : i32
    %c0_i32_0 = arith.constant 0 : i32
    return %arg0, %c0_i32 : i32, i32
  }
}

</mosaic_0001>

<bundles_post_ra>
// kernel: tpu_custom_call.1
= control target key start
LH: loop header
LB: loop body
LE: loop exit
PB: predicated region body
PF: predicated region fallthrough
CT: control target
= control target key end

     0   :  { %s4259_s0 = inlined_call_operand.hbm [shape: f32[16,256], index: 0, kind: input, shape index: {}]   ;;  %s4260_s1 = inlined_call_operand.hbm [shape: f32[256,128], index: 1, kind: input, shape index: {}]   ;;  %s4261_s2 = inlined_call_operand.hbm [shape: f32[1,128], index: 2, kind: input, shape index: {}]   ;;  %s4262_s3 = inlined_call_operand.hbm [shape: f32[128,128], index: 3, kind: input, shape index: {}]   ;;  %s4263_s4 = inlined_call_operand.hbm [shape: f32[1,128], index: 4, kind: input, shape index: {}]   ;;  %s4264_s5 = inlined_call_operand.hbm [shape: f32[128,128], index: 5, kind: input, shape index: {}]   ;;  %s4265_s6 = inlined_call_operand.hbm [shape: f32[1,128], index: 6, kind: input, shape index: {}]   ;;  %s4266_s7 = inlined_call_operand.hbm [shape: f32[128,128], index: 7, kind: input, shape index: {}]   ;;  %s4267_s8 = inlined_call_operand.hbm [shape: f32[1,128], index: 8, kind: input, shape index: {}]   ;;  %s4268_s9 = inlined_call_operand.hbm [shape: f32[16,1024], index: 9, kind: input, shape index: {}]   ;;  %s4269_s10 = inlined_call_operand.hbm [shape: f32[16,1024], index: 10, kind: input, shape index: {}]   ;;  %s4270_s11 = inlined_call_operand.hbm [shape: f32[16,1024], index: 11, kind: input, shape index: {}]   ;;  %s4271_s12 = inlined_call_operand.hbm [shape: f32[16,1024], index: 12, kind: input, shape index: {}]   ;;  %s4272_s13 = inlined_call_operand.hbm [shape: f32[16,1], index: 13, kind: output, shape index: {0}]   ;;  %s4273_s14 = inlined_call_operand.hbm [shape: f32[16,128], index: 14, kind: output, shape index: {1}]  }
   0x1   :  { %4304 = sst [smem:[#allocation58_spill]] %s4260_s1 }
   0x2   :  { %4305 = sst [smem:[#allocation59_spill]] %s4262_s3 }
   0x3   :  { %4306 = sst [smem:[#allocation60_spill]] %s4264_s5 }
   0x4   :  { %4307 = sst [smem:[#allocation61_spill]] %s4265_s6 }
   0x5   :  { %4308 = sst [smem:[#allocation62_spill]] %s4266_s7 }
   0x6   :  { %4309 = sst [smem:[#allocation63_spill]] %s4267_s8 }
   0x7   :  { %4310 = sst [smem:[#allocation64_spill]] %s4268_s9 }
   0x8   :  { %4311 = sst [smem:[#allocation65_spill]] %s4269_s10 }
   0x9   :  { %4312 = sst [smem:[#allocation66_spill]] %s4270_s11 }
   0xa   :  { %4313 = sst [smem:[#allocation67_spill]] %s4271_s12 }
   0xb   :  { %4314 = sst [smem:[#allocation68_spill]] %s4272_s13 }
   0xc   :  { %4315 = sst [smem:[#allocation69_spill]] %s4273_s14 }
   0xd   :  { %20 = vsyncpa [#allocation8], 0 }
   0xe   :  { %21 = vsyncpa [#allocation11], 0 }
   0xf   :  { %22 = vsyncpa [#allocation14], 0 }
  0x10   :  { %23 = vsyncpa [#allocation17], 0 }
  0x11   :  { %24 = vsyncpa [#allocation20], 0 }
  0x12   :  { %25 = vsyncpa [#allocation23], 0 }
  0x13   :  { %27 = vsyncpa [#allocation23 + $0x1], 0 }
  0x14   :  { %28 = vsyncpa [#allocation26], 0 }
  0x15   :  { %30 = vsyncpa [#allocation26 + $0x1], 0 }
  0x16   :  { %31 = vsyncpa [#allocation9], 0 }
  0x17   :  { %32 = vsyncpa [#allocation30], 0  ;;  %s3296_s29 = smov 0   ;;  %s3298_s30 = smov 0  }
  0x18   :  { %s3300_s15 = smov 0   ;;  %s3302_s16 = smov 0  }
  0x19   :  { %s3304_s17 = smov 0   ;;  %s3306_s18 = smov 0  }
  0x1a LB: > { %4316 = sst [smem:[#allocation40_spill]] %s3173_s15  ;;  %s3187_s19 = smov [#allocation10]   ;;  %s3185_s18 = sphi %s3306_s18, %s38_s18   ;;  %s3181_s17 = sphi %s3304_s17, %s4393_s17   ;;  %s3177_s16 = sphi %s3302_s16, %s4392_s16   ;;  %s3173_s15 = sphi %s3300_s15, %s4391_s15   ;;  %s3169_s30 = sphi %s3298_s30, %s4395_s30   ;;  %s3165_s29 = sphi %s3296_s29, %s4394_s29  }
  0x1b   : > { %4317 = sst [smem:[#allocation41_spill]] %s3177_s16  ;;  %s442_s20 = sshll.u32 %s3187_s19, 4  ;;  %s3332_s20 = int_to_ptr.vmem [resolvable:$true] %s442_s20 }
  0x1c   : > { %4318 = sst [smem:[#allocation42_spill]] %s3181_s17  ;;  %s3327_s21 = sadd.s32 4294967295, %s3185_s18  }
  0x1d   : > { %4319 = sst [smem:[#allocation43_spill]] %s3185_s18  ;;  %p2013_p0 = scmp.ge.s32.totalorder %s3185_s18, 1 }
  0x1e   : > { %p4282_p1 = scmp.eq.s32.totalorder %s3327_s21, 0  ;;  %p413_p2 = scmp.lt.s32.totalorder %s3185_s18, 3 }
  0x1f   : > { %s3188_s23 = smov [#allocation13]   ;;  %s3189_s26 = smov [#allocation16]  }
  0x20   : > { %p3334_p3 = pnand %p2013_p0, %p413_p2  ;;  %s466_s24 = sshll.u32 %s3188_s23, 4  ;;  %s3346_s24 = int_to_ptr.vmem [resolvable:$true] %s466_s24 }
  0x21   : > { %s490_s27 = sshll.u32 %s3189_s26, 4  ;;  %s4323_s1 = sld [smem:[#allocation58_spill]]  ;;  %s3348_s27 = int_to_ptr.vmem [resolvable:$true] %s490_s27 }
  0x22   : > { %s4320_s22 = scalar_select %p3334_p3, 1, 0 }
  0x23   : > { %p2476_p4 = pneg %p3334_p3 }
  0x24   : > { %4321 = sst [smem:[#allocation44_spill]] %s4320_s22 }
  0x25   : > { %p3342_p5 = pnand %p2476_p4, %p4282_p1 }
  0x27   : > { %s4322_s25 = scalar_select %p3342_p5, 1, 0 }
  0x28   : > { %s2679_s14 = scalar_lea.hbm %s4323_s1, 4096  ;;  %p3358_p7 = pneg %p3342_p5 }
  0x29   : > { %p2680_p6 = scmp.ne.s32.totalorder %s4323_s1, %s2679_s14  ;;  %p2686_p10 = scmp.lt.u32.totalorder %s2679_s14, %s4323_s1 }
  0x2a   : > { %s4324_s23 = scalar_select %p3358_p7, 1, 0 }
  0x2b   : > { %p2682_p8 = pnand %p3358_p7, %p2680_p6 }
  0x2d   : > { %p2683_p9 = pneg %p2682_p8 }
  0x2f   : > { %p2688_p11 = pnand %p2686_p10, %p2683_p9 }
  0x31   : > { %2691 = shalt.err (!%p2688_p11)
}
  0x32   : > { %s2692_s13 = scalar_lea.vmem %s3332_s20, 4096  ;;  %p2700_p2 = scmp.lt.s32.totalorder %s3332_s20, %s3332_s20 }
  0x33   : > { %p2693_p12 = scmp.ne.s32.totalorder %s3332_s20, %s2692_s13  ;;  %p2701_p4 = scmp.lt.s32.totalorder %s2692_s13, %s2692_s13 }
  0x35   : > { %p2695_p13 = pnand %p2693_p12, %p3358_p7  ;;  %p2702_p6 = por %p2701_p4, %p2700_p2 }
  0x37   : > { %p2696_p0 = pneg %p2695_p13 }
  0x39   : > { %p2703_p8 = pnand %p2702_p6, %p2696_p0 }
  0x3b   : > { %2706 = shalt.err (!%p2703_p8)
}
  0x3c   : > { %s3190_s16 = smov 128   ;;  %s3191_s14 = smov 8  }
  0x3d   : > { %2482 = dma.hbm_to_vmem [thread:$0]  (!%p3342_p5), %s4323_s1, 4096, %s3332_s20, [#allocation11], %s3190_s16, %s3190_s16, %s3191_s14  }
  0x3e   : > { %s4325_s3 = sld [smem:[#allocation59_spill]] }
  0x44   : > { %s2707_s13 = scalar_lea.hbm %s4325_s3, 2048 }
  0x45   : > { %p2708_p9 = scmp.ne.s32.totalorder %s4325_s3, %s2707_s13  ;;  %p2714_p12 = scmp.lt.u32.totalorder %s2707_s13, %s4325_s3 }
  0x47   : > { %p2710_p10 = pnand %p2708_p9, %p3358_p7 }
  0x49   : > { %p2711_p11 = pneg %p2710_p10 }
  0x4b   : > { %p2716_p13 = pnand %p2714_p12, %p2711_p11 }
  0x4d   : > { %2719 = shalt.err (!%p2716_p13)
}
  0x4e   : > { %s2720_s20 = scalar_lea.vmem %s3346_s24, 2048  ;;  %p2728_p6 = scmp.lt.s32.totalorder %s3346_s24, %s3346_s24 }
  0x4f   : > { %p2721_p0 = scmp.ne.s32.totalorder %s3346_s24, %s2720_s20  ;;  %p2729_p8 = scmp.lt.s32.totalorder %s2720_s20, %s2720_s20 }
  0x51   : > { %p2723_p2 = pnand %p2721_p0, %p3358_p7  ;;  %p2730_p9 = por %p2729_p8, %p2728_p6 }
  0x53   : > { %p2724_p4 = pneg %p2723_p2 }
  0x55   : > { %p2731_p10 = pnand %p2730_p9, %p2724_p4 }
  0x57   : > { %2734 = shalt.err (!%p2731_p10)
}
  0x58   : > { %2488 = dma.hbm_to_vmem [thread:$0]  (!%p3342_p5), %s4325_s3, 2048, %s3346_s24, [#allocation14], %s3190_s16, %s3190_s16, %s3191_s14  }
  0x59   : > { %s4326_s5 = sld [smem:[#allocation60_spill]] }
  0x5f   : > { %s2735_s22 = scalar_lea.hbm %s4326_s5, 2048 }
  0x60   : > { %p2736_p11 = scmp.ne.s32.totalorder %s4326_s5, %s2735_s22  ;;  %p2742_p0 = scmp.lt.u32.totalorder %s2735_s22, %s4326_s5 }
  0x62   : > { %p2738_p12 = pnand %p2736_p11, %p3358_p7 }
  0x64   : > { %p2739_p13 = pneg %p2738_p12 }
  0x66   : > { %p2744_p2 = pnand %p2742_p0, %p2739_p13 }
  0x68   : > { %2747 = shalt.err (!%p2744_p2)
}
  0x69   : > { %s2748_s24 = scalar_lea.vmem %s3348_s27, 2048  ;;  %p2756_p9 = scmp.lt.s32.totalorder %s3348_s27, %s3348_s27 }
  0x6a   : > { %p2749_p4 = scmp.ne.s32.totalorder %s3348_s27, %s2748_s24  ;;  %p2757_p10 = scmp.lt.s32.totalorder %s2748_s24, %s2748_s24 }
  0x6c   : > { %p2751_p6 = pnand %p2749_p4, %p3358_p7  ;;  %p2758_p11 = por %p2757_p10, %p2756_p9 }
  0x6e   : > { %p2752_p8 = pneg %p2751_p6 }
  0x70   : > { %p2759_p12 = pnand %p2758_p11, %p2752_p8 }
  0x72   : > { %2762 = shalt.err (!%p2759_p12)
}
  0x73   : > { %2494 = dma.hbm_to_vmem [thread:$0]  (!%p3342_p5), %s4326_s5, 2048, %s3348_s27, [#allocation17], %s3190_s16, %s3190_s16, %s3191_s14  }
  0x74   : > { %s3192_s8 = smov [#allocation19]   ;;  %s4327_s7 = sld [smem:[#allocation62_spill]] }
  0x75   : > { %s514_s10 = sshll.u32 %s3192_s8, 4  ;;  %s515_s10 = int_to_ptr.vmem [resolvable:$true] %s514_s10 }
  0x7a   : > { %s2763_s28 = scalar_lea.hbm %s4327_s7, 2048 }
  0x7b   : > { %p2764_p13 = scmp.ne.s32.totalorder %s4327_s7, %s2763_s28  ;;  %p2770_p4 = scmp.lt.u32.totalorder %s2763_s28, %s4327_s7 }
  0x7d   : > { %p2766_p0 = pnand %p2764_p13, %p3358_p7 }
  0x7f   : > { %p2767_p2 = pneg %p2766_p0 }
  0x81   : > { %p2772_p6 = pnand %p2770_p4, %p2767_p2 }
  0x83   : > { %2775 = shalt.err (!%p2772_p6)
}
  0x84   : > { %s2776_s27 = scalar_lea.vmem %s515_s10, 2048  ;;  %p2784_p11 = scmp.lt.s32.totalorder %s515_s10, %s515_s10 }
  0x85   : > { %p2777_p8 = scmp.ne.s32.totalorder %s515_s10, %s2776_s27  ;;  %p2785_p12 = scmp.lt.s32.totalorder %s2776_s27, %s2776_s27 }
  0x87   : > { %p2779_p9 = pnand %p2777_p8, %p3358_p7  ;;  %p2786_p1 = por %p2785_p12, %p2784_p11 }
  0x89   : > { %p2780_p10 = pneg %p2779_p9 }
  0x8b   : > { %p2787_p3 = pnand %p2786_p1, %p2780_p10 }
  0x8d   : > { %2790 = shalt.err (!%p2787_p3)
}
  0x8e   : > { %2500 = dma.hbm_to_vmem [thread:$0]  (!%p3342_p5), %s4327_s7, 2048, %s515_s10, [#allocation20], %s3190_s16, %s3190_s16, %s3191_s14  }
  0x8f   : > { %s47_s8 = sadd.s32 1, %s3181_s17  ;;  %s253_s12 = sadd.s32 1, %s3173_s15 }
  0x90   : > { %p48_p1 = scmp.ge.s32.totalorder %s47_s8, 2  ;;  %p260_p3 = scmp.ne.s32.totalorder %s3173_s15, %s3169_s30 }
  0x91   : > { %p261_p13 = scmp.eq.s32.totalorder %s3185_s18, 0  ;;  %p266_p0 = scmp.ne.s32.totalorder %s3169_s30, %s3165_s29 }
  0x92   : > { %s4397_s8 = smov (%p48_p1, %s47_s8), 0  ;;  %p4330_p4 = scmp.eq.s32.totalorder %s3327_s21, 0 }
  0x93   : > { %4328 = sst [smem:[#allocation45_spill]] %s4397_s8  ;;  %p3464_p2 = por %p261_p13, %p260_p3 }
  0x94   : > { %p3470_p6 = por %p4330_p4, %p266_p0  ;;  %s249_s16 = ssub.s32 %s3181_s17, %s4397_s8 }
  0x95   : > { %p2526_p8 = scmp.lt.s32.totalorder %s3185_s18, 2  ;;  %p251_p9 = scmp.eq.s32.totalorder %s249_s16, 0 }
  0x96   : > { %s4331_s28 = scalar_select %p3470_p6, 1, 0 }
  0x97   : > { %s4284_s14 = sand.u32 1, %s3185_s18   ;;  %s541_s10 = sand.u32 1, %s3173_s15  }
  0x98   : > { %s3480_s29 = scalar_select %p251_p9, %s3173_s15, %s253_s12  }
  0x99   : > { %s3482_s19 = sshll.u32 %s541_s10, 6  ;;  %s3485_s26 = sshll.u32 %s3181_s17, 9 }
  0x9a   : > { %4332 = sst [smem:[#allocation46_spill]] %s3480_s29  ;;  %s4333_s9 = sld [smem:[#allocation64_spill]] }
  0x9b   : > { %s543_s20 = scalar_lea.vmem [#allocation22], %s3482_s19  ;;  %p3496_p10 = pnand %p2526_p8, %p3464_p2 }
  0x9c   : > { %s553_s6 = sshll.u32 %s543_s20, 4  ;;  %s3504_s16 = scalar_lea.sflag [#allocation23], %s4284_s14  ;;  %s3500_s6 = int_to_ptr.vmem [resolvable:$true] %s553_s6 }
  0x9d   : > { %s4334_s12 = scalar_select %p3496_p10, 1, 0 }
  0x9e   : > { %p3510_p12 = pneg %p3496_p10 }
  0xa0   : > { %s3491_s27 = scalar_lea.hbm %s4333_s9, %s3485_s26  ;;  %s2796_s20 = scalar_lea.hbm %s4333_s9, 2048 }
  0xa1   : > { %s2791_s10 = scalar_lea.hbm %s3491_s27, 1024  ;;  %p2797_p13 = scmp.lt.u32.totalorder %s3491_s27, %s4333_s9 }
  0xa2   : > { %p2792_p11 = scmp.ne.s32.totalorder %s3491_s27, %s2791_s10  ;;  %p2798_p0 = scmp.lt.u32.totalorder %s2796_s20, %s2791_s10 }
  0xa3   : > { %s4335_s13 = scalar_select %p3510_p12, 1, 0 }
  0xa4   : > { %p2794_p1 = pnand %p3510_p12, %p2792_p11  ;;  %p2799_p2 = por %p2798_p0, %p2797_p13 }
  0xa5   : > { %p2800_p4 = scmp.lt.u32.totalorder %s2791_s10, %s3491_s27 }
  0xa6   : > { %p2795_p3 = pneg %p2794_p1 }
  0xa7   : > { %p2801_p8 = por %p2800_p4, %p2799_p2 }
  0xa9   : > { %p2802_p9 = pnand %p2801_p8, %p2795_p3 }
  0xab   : > { %2805 = shalt.err (!%p2802_p9)
}
  0xac   : > { %s2806_s14 = scalar_lea.vmem %s3500_s6, 1024  ;;  %s3193_s22 = smov [#allocation22]  }
  0xad   : > { %p2807_p11 = scmp.ne.s32.totalorder %s3500_s6, %s2806_s14  ;;  %s2811_s24 = sshll.u32 %s3193_s22, 4  ;;  %s2812_s24 = int_to_ptr.vmem [resolvable:$false] %s2811_s24 }
  0xae   : > { %s2813_s1 = scalar_lea.vmem %s2812_s24, 2048  ;;  %p2814_p5 = scmp.lt.s32.totalorder %s3500_s6, %s2812_s24 }
  0xaf   : > { %p2809_p1 = pnand %p2807_p11, %p3510_p12  ;;  %p2815_p7 = scmp.lt.s32.totalorder %s2813_s1, %s2806_s14 }
  0xb1   : > { %p2810_p6 = pneg %p2809_p1  ;;  %p2816_p13 = por %p2815_p7, %p2814_p5 }
  0xb3   : > { %p2817_p0 = pnand %p2816_p13, %p2810_p6 }
  0xb5   : > { %2820 = shalt.err (!%p2817_p0)
}
  0xb6   : > { %s4291_s3 = smov 1024   ;;  %s4296_s10 = smov 512  }
  0xb7   : > { %s4298_s20 = smov 32   ;;  %s4336_s11 = sld [smem:[#allocation66_spill]] }
  0xb8   : > { %2507 = dma.hbm_to_vmem [thread:$0]  (!%p3496_p10), %s3491_s27, 1024, %s3500_s6, %s3504_s16, %s4291_s3, %s4296_s10, %s4298_s20  }
  0xb9   : > { %s591_s1 = scalar_lea.vmem [#allocation25], %s3482_s19  ;;  %s4337_s7 = sand.u32 1, %s3185_s18  }
  0xba   : > { %s601_s5 = sshll.u32 %s591_s1, 4  ;;  %s3548_s9 = scalar_lea.sflag [#allocation26], %s4337_s7  ;;  %s3544_s5 = int_to_ptr.vmem [resolvable:$true] %s601_s5 }
  0xbd   : > { %s3541_s24 = scalar_lea.hbm %s4336_s11, %s3485_s26  ;;  %s2826_s14 = scalar_lea.hbm %s4336_s11, 2048 }
  0xbe   : > { %s2821_s8 = scalar_lea.hbm %s3541_s24, 1024  ;;  %p2827_p3 = scmp.lt.u32.totalorder %s3541_s24, %s4336_s11 }
  0xbf   : > { %p2822_p5 = scmp.ne.s32.totalorder %s3541_s24, %s2821_s8  ;;  %p2828_p2 = scmp.lt.u32.totalorder %s2826_s14, %s2821_s8 }
  0xc0   : > { %p2830_p8 = scmp.lt.u32.totalorder %s2821_s8, %s3541_s24 }
  0xc1   : > { %p2824_p7 = pnand %p2822_p5, %p3510_p12  ;;  %p2829_p4 = por %p2828_p2, %p2827_p3 }
  0xc3   : > { %p2825_p6 = pneg %p2824_p7  ;;  %p2831_p9 = por %p2830_p8, %p2829_p4 }
  0xc5   : > { %p2832_p11 = pnand %p2831_p9, %p2825_p6 }
  0xc7   : > { %2835 = shalt.err (!%p2832_p11)
}
  0xc8   : > { %s2836_s7 = scalar_lea.vmem %s3544_s5, 1024  ;;  %s3197_s1 = smov [#allocation25]  }
  0xc9   : > { %p2837_p1 = scmp.ne.s32.totalorder %s3544_s5, %s2836_s7  ;;  %s2841_s27 = sshll.u32 %s3197_s1, 4  ;;  %s2842_s27 = int_to_ptr.vmem [resolvable:$false] %s2841_s27 }
  0xca   : > { %s2843_s3 = scalar_lea.vmem %s2842_s27, 2048  ;;  %p2844_p5 = scmp.lt.s32.totalorder %s3544_s5, %s2842_s27 }
  0xcb   : > { %p2839_p13 = pnand %p2837_p1, %p3510_p12  ;;  %p2845_p7 = scmp.lt.s32.totalorder %s2843_s3, %s2836_s7 }
  0xcd   : > { %p2840_p0 = pneg %p2839_p13  ;;  %p2846_p3 = por %p2845_p7, %p2844_p5 }
  0xcf   : > { %p2847_p2 = pnand %p2846_p3, %p2840_p0 }
  0xd1   : > { %2850 = shalt.err (!%p2847_p2)
}
  0xd2   : > { %s4338_s8 = smov 1024   ;;  %s3198_s6 = smov [#allocation7]  }
  0xd3   : > { %2513 = dma.hbm_to_vmem [thread:$0]  (!%p3496_p10), %s3541_s24, 1024, %s3544_s5, %s3548_s9, %s4338_s8, %s4296_s10, %s4298_s20  }
  0xd4   : > { %s429_s14 = sshll.u32 %s3198_s6, 4  ;;  %s2851_s7 = scalar_lea.hbm %s4259_s0, 512  ;;  %s430_s14 = int_to_ptr.vmem [resolvable:$true] %s429_s14 }
  0xd5   : > { %p2852_p6 = scmp.ne.s32.totalorder %s4259_s0, %s2851_s7  ;;  %p4339_p4 = scmp.ne.s32.totalorder %s4324_s23, 0 }
  0xd6   : > { %p2858_p11 = scmp.lt.u32.totalorder %s2851_s7, %s4259_s0 }
  0xd7   : > { %p2854_p8 = pnand %p2852_p6, %p4339_p4 }
  0xd9   : > { %p2855_p9 = pneg %p2854_p8 }
  0xdb   : > { %p2860_p1 = pnand %p2858_p11, %p2855_p9 }
  0xdd   : > { %2863 = shalt.err (!%p2860_p1)
}
  0xde   : > { %s2864_s5 = scalar_lea.vmem %s430_s14, 512  ;;  %p2872_p7 = scmp.lt.s32.totalorder %s430_s14, %s430_s14 }
  0xdf   : > { %p2865_p13 = scmp.ne.s32.totalorder %s430_s14, %s2864_s5  ;;  %p2873_p3 = scmp.lt.s32.totalorder %s2864_s5, %s2864_s5 }
  0xe1   : > { %p2867_p0 = pnand %p2865_p13, %p4339_p4  ;;  %p2874_p2 = por %p2873_p3, %p2872_p7 }
  0xe3   : > { %p2868_p5 = pneg %p2867_p0 }
  0xe5   : > { %p2875_p10 = pnand %p2874_p2, %p2868_p5 }
  0xe7   : > { %2878 = shalt.err (!%p2875_p10)
}
  0xe8   : > { %s3199_s24 = smov 256   ;;  %s3200_s6 = smov 16  }
  0xe9   : > { %p4340_p6 = scmp.ne.s32.totalorder %s4322_s25, 0  ;;  %s3201_s22 = smov [#allocation12]  }
  0xea   : > { %s456_s1 = sshll.u32 %s3201_s22, 4  ;;  %s3202_s7 = smov [#allocation15]   ;;  %s457_s1 = int_to_ptr.vmem [resolvable:$true] %s456_s1 }
  0xeb   : > { %2479 = dma.hbm_to_vmem [thread:$0]  (!%p4340_p6), %s4259_s0, 512, %s430_s14, [#allocation8], %s3199_s24, %s3199_s24, %s3200_s6  }
  0xec   : > { %s480_s27 = sshll.u32 %s3202_s7, 4  ;;  %s2879_s5 = scalar_lea.hbm %s4261_s2, 16  ;;  %s481_s27 = int_to_ptr.vmem [resolvable:$true] %s480_s27 }
  0xed   : > { %p2880_p10 = scmp.ne.s32.totalorder %s4261_s2, %s2879_s5  ;;  %p2886_p11 = scmp.lt.u32.totalorder %s2879_s5, %s4261_s2 }
  0xef   : > { %p2882_p8 = pnand %p2880_p10, %p4339_p4 }
  0xf1   : > { %p2883_p9 = pneg %p2882_p8 }
  0xf3   : > { %p2888_p1 = pnand %p2886_p11, %p2883_p9 }
  0xf5   : > { %2891 = shalt.err (!%p2888_p1)
}
  0xf6   : > { %s2892_s14 = scalar_lea.vmem %s457_s1, 16  ;;  %s2899_s10 = scalar_lea.vmem %s457_s1, 32 }
  0xf7   : > { %p2893_p13 = scmp.ne.s32.totalorder %s457_s1, %s2892_s14  ;;  %p2900_p7 = scmp.lt.s32.totalorder %s457_s1, %s457_s1 }
  0xf8   : > { %p2901_p3 = scmp.lt.s32.totalorder %s2899_s10, %s2892_s14 }
  0xf9   : > { %p2895_p0 = pnand %p2893_p13, %p4339_p4 }
  0xfa   : > { %p2902_p2 = por %p2901_p3, %p2900_p7 }
  0xfb   : > { %p2896_p5 = pneg %p2895_p0 }
  0xfd   : > { %p2903_p12 = pnand %p2902_p2, %p2896_p5 }
  0xff   : > { %2906 = shalt.err (!%p2903_p12)
}
 0x100   : > { %2485 = dma.hbm_to_vmem [thread:$0]  (!%p4340_p6), %s4261_s2, 16, %s457_s1, [#allocation11]  }
 0x101   : > { %s2907_s24 = scalar_lea.hbm %s4263_s4, 16 }
 0x102   : > { %p2908_p10 = scmp.ne.s32.totalorder %s4263_s4, %s2907_s24  ;;  %p2914_p12 = scmp.lt.u32.totalorder %s2907_s24, %s4263_s4 }
 0x104   : > { %p2910_p8 = pnand %p2908_p10, %p4339_p4 }
 0x106   : > { %p2911_p9 = pneg %p2910_p8 }
 0x108   : > { %p2916_p11 = pnand %p2914_p12, %p2911_p9 }
 0x10a   : > { %2919 = shalt.err (!%p2916_p11)
}
 0x10b   : > { %s2920_s7 = scalar_lea.vmem %s481_s27, 16  ;;  %s2927_s1 = scalar_lea.vmem %s481_s27, 32 }
 0x10c   : > { %p2921_p1 = scmp.ne.s32.totalorder %s481_s27, %s2920_s7  ;;  %p2928_p5 = scmp.lt.s32.totalorder %s481_s27, %s481_s27 }
 0x10d   : > { %p2929_p7 = scmp.lt.s32.totalorder %s2927_s1, %s2920_s7 }
 0x10e   : > { %p2923_p13 = pnand %p2921_p1, %p4339_p4 }
 0x10f   : > { %p2930_p3 = por %p2929_p7, %p2928_p5 }
 0x110   : > { %p2924_p0 = pneg %p2923_p13 }
 0x112   : > { %p2931_p2 = pnand %p2930_p3, %p2924_p0 }
 0x114   : > { %2934 = shalt.err (!%p2931_p2)
}
 0x115   : > { %2491 = dma.hbm_to_vmem [thread:$0]  (!%p4340_p6), %s4263_s4, 16, %s481_s27, [#allocation14]  }
 0x116   : > { %s3203_s14 = smov [#allocation18]   ;;  %s3204_s29 = smov [#allocation21]  }
 0x117   : > { %s504_s10 = sshll.u32 %s3203_s14, 4  ;;  %s528_s20 = sshll.u32 %s3204_s29, 4  ;;  %s505_s10 = int_to_ptr.vmem [resolvable:$true] %s504_s10  ;;  %s529_s20 = int_to_ptr.vmem [resolvable:$true] %s528_s20 }
 0x118   : > { %s4341_s24 = sld [smem:[#allocation61_spill]] }
 0x11e   : > { %s2935_s6 = scalar_lea.hbm %s4341_s24, 16 }
 0x11f   : > { %p2936_p10 = scmp.ne.s32.totalorder %s4341_s24, %s2935_s6  ;;  %p2942_p12 = scmp.lt.u32.totalorder %s2935_s6, %s4341_s24 }
 0x121   : > { %p2938_p8 = pnand %p2936_p10, %p4339_p4 }
 0x123   : > { %p2939_p9 = pneg %p2938_p8 }
 0x125   : > { %p2944_p11 = pnand %p2942_p12, %p2939_p9 }
 0x127   : > { %2947 = shalt.err (!%p2944_p11)
}
 0x128   : > { %s2948_s27 = scalar_lea.vmem %s505_s10, 16  ;;  %s2955_s1 = scalar_lea.vmem %s505_s10, 32 }
 0x129   : > { %p2949_p1 = scmp.ne.s32.totalorder %s505_s10, %s2948_s27  ;;  %p2956_p5 = scmp.lt.s32.totalorder %s505_s10, %s505_s10 }
 0x12a   : > { %p2957_p7 = scmp.lt.s32.totalorder %s2955_s1, %s2948_s27 }
 0x12b   : > { %p2951_p13 = pnand %p2949_p1, %p4339_p4 }
 0x12c   : > { %p2958_p3 = por %p2957_p7, %p2956_p5 }
 0x12d   : > { %p2952_p0 = pneg %p2951_p13 }
 0x12f   : > { %p2959_p2 = pnand %p2958_p3, %p2952_p0 }
 0x131   : > { %2962 = shalt.err (!%p2959_p2)
}
 0x132   : > { %2497 = dma.hbm_to_vmem [thread:$0]  (!%p4340_p6), %s4341_s24, 16, %s505_s10, [#allocation17]  }
 0x133   : > { %s4342_s15 = sld [smem:[#allocation63_spill]] }
 0x139   : > { %s4343_s6 = smov %s4342_s15  ;;  %s2963_s18 = scalar_lea.hbm %s4342_s15, 16 }
 0x13a   : > { %p2964_p10 = scmp.ne.s32.totalorder %s4343_s6, %s2963_s18  ;;  %p2970_p12 = scmp.lt.u32.totalorder %s2963_s18, %s4343_s6 }
 0x13c   : > { %p2966_p8 = pnand %p2964_p10, %p4339_p4 }
 0x13e   : > { %p2967_p9 = pneg %p2966_p8 }
 0x140   : > { %p2972_p11 = pnand %p2970_p12, %p2967_p9 }
 0x142   : > { %2975 = shalt.err (!%p2972_p11)
}
 0x143   : > { %s2976_s27 = scalar_lea.vmem %s529_s20, 16  ;;  %s2983_s10 = scalar_lea.vmem %s529_s20, 32 }
 0x144   : > { %p2977_p1 = scmp.ne.s32.totalorder %s529_s20, %s2976_s27  ;;  %p2984_p5 = scmp.lt.s32.totalorder %s529_s20, %s529_s20 }
 0x145   : > { %p2985_p7 = scmp.lt.s32.totalorder %s2983_s10, %s2976_s27 }
 0x146   : > { %p2979_p13 = pnand %p2977_p1, %p4339_p4 }
 0x147   : > { %p2986_p3 = por %p2985_p7, %p2984_p5 }
 0x148   : > { %p2980_p0 = pneg %p2979_p13 }
 0x14a   : > { %p2987_p2 = pnand %p2986_p3, %p2980_p0 }
 0x14c   : > { %2990 = shalt.err (!%p2987_p2)
}
 0x14d   : > { %2503 = dma.hbm_to_vmem [thread:$0]  (!%p4340_p6), %s4343_s6, 16, %s529_s20, [#allocation20]  }
 0x14e   : > { %s4344_s23 = sld [smem:[#allocation65_spill]]  ;;  %s567_s15 = scalar_lea.vmem [#allocation24], %s3482_s19 }
 0x14f   : > { %s577_s18 = sshll.u32 %s567_s15, 4  ;;  %p4345_p10 = scmp.ne.s32.totalorder %s4335_s13, 0  ;;  %s3672_s18 = int_to_ptr.vmem [resolvable:$true] %s577_s18 }
 0x154   : > { %s3669_s29 = scalar_lea.hbm %s4344_s23, %s3485_s26  ;;  %s2996_s17 = scalar_lea.hbm %s4344_s23, 2048 }
 0x155   : > { %s2991_s25 = scalar_lea.hbm %s3669_s29, 1024  ;;  %p2997_p6 = scmp.lt.u32.totalorder %s3669_s29, %s4344_s23 }
 0x156   : > { %p2992_p4 = scmp.ne.s32.totalorder %s3669_s29, %s2991_s25  ;;  %p2998_p12 = scmp.lt.u32.totalorder %s2996_s17, %s2991_s25 }
 0x157   : > { %p3000_p1 = scmp.lt.u32.totalorder %s2991_s25, %s3669_s29 }
 0x158   : > { %p2994_p8 = pnand %p2992_p4, %p4345_p10  ;;  %p2999_p11 = por %p2998_p12, %p2997_p6 }
 0x15a   : > { %p2995_p9 = pneg %p2994_p8  ;;  %p3001_p13 = por %p3000_p1, %p2999_p11 }
 0x15c   : > { %p3002_p0 = pnand %p3001_p13, %p2995_p9 }
 0x15e   : > { %3005 = shalt.err (!%p3002_p0)
}
 0x15f   : > { %s3006_s27 = scalar_lea.vmem %s3672_s18, 1024  ;;  %s3205_s10 = smov [#allocation24]  }
 0x160   : > { %p3007_p5 = scmp.ne.s32.totalorder %s3672_s18, %s3006_s27  ;;  %s3011_s1 = sshll.u32 %s3205_s10, 4  ;;  %s3012_s1 = int_to_ptr.vmem [resolvable:$false] %s3011_s1 }
 0x161   : > { %s3013_s3 = scalar_lea.vmem %s3012_s1, 2048  ;;  %p3014_p2 = scmp.lt.s32.totalorder %s3672_s18, %s3012_s1 }
 0x162   : > { %p3009_p7 = pnand %p3007_p5, %p4345_p10  ;;  %p3015_p4 = scmp.lt.s32.totalorder %s3013_s3, %s3006_s27 }
 0x164   : > { %p3010_p3 = pneg %p3009_p7  ;;  %p3016_p8 = por %p3015_p4, %p3014_p2 }
 0x166   : > { %p3017_p6 = pnand %p3016_p8, %p3010_p3 }
 0x168   : > { %3020 = shalt.err (!%p3017_p6)
}
 0x169   : > { %p4346_p9 = scmp.ne.s32.totalorder %s4334_s12, 0  ;;  %s4347_s5 = smov 32  }
 0x16a   : > { %s4348_s14 = smov 512   ;;  %s4349_s11 = sld [smem:[#allocation67_spill]] }
 0x16b   : > { %2510 = dma.hbm_to_vmem [thread:$0]  (!%p4346_p9), %s3669_s29, 1024, %s3672_s18, %s3504_s16, %s4338_s8, %s4348_s14, %s4347_s5  }
 0x16c   : > { %s615_s17 = scalar_lea.vmem [#allocation27], %s3482_s19 }
 0x16d   : > { %s625_s22 = sshll.u32 %s615_s17, 4  ;;  %s3706_s22 = int_to_ptr.vmem [resolvable:$true] %s625_s22 }
 0x170   : > { %s3703_s20 = scalar_lea.hbm %s4349_s11, %s3485_s26  ;;  %s3026_s29 = scalar_lea.hbm %s4349_s11, 2048 }
 0x171   : > { %s3021_s7 = scalar_lea.hbm %s3703_s20, 1024  ;;  %p3027_p13 = scmp.lt.u32.totalorder %s3703_s20, %s4349_s11 }
 0x172   : > { %p3022_p12 = scmp.ne.s32.totalorder %s3703_s20, %s3021_s7  ;;  %p3028_p0 = scmp.lt.u32.totalorder %s3026_s29, %s3021_s7 }
 0x173   : > { %p3030_p7 = scmp.lt.u32.totalorder %s3021_s7, %s3703_s20 }
 0x174   : > { %p3024_p11 = pnand %p3022_p12, %p4345_p10  ;;  %p3029_p5 = por %p3028_p0, %p3027_p13 }
 0x176   : > { %p3025_p1 = pneg %p3024_p11  ;;  %p3031_p3 = por %p3030_p7, %p3029_p5 }
 0x178   : > { %p3032_p2 = pnand %p3031_p3, %p3025_p1 }
 0x17a   : > { %3035 = shalt.err (!%p3032_p2)
}
 0x17b   : > { %s3036_s19 = scalar_lea.vmem %s3706_s22, 1024  ;;  %s3206_s10 = smov [#allocation27]  }
 0x17c   : > { %p3037_p4 = scmp.ne.s32.totalorder %s3706_s22, %s3036_s19  ;;  %s3041_s1 = sshll.u32 %s3206_s10, 4  ;;  %s3042_s1 = int_to_ptr.vmem [resolvable:$false] %s3041_s1 }
 0x17d   : > { %s3043_s3 = scalar_lea.vmem %s3042_s1, 2048  ;;  %p3044_p12 = scmp.lt.s32.totalorder %s3706_s22, %s3042_s1 }
 0x17e   : > { %p3039_p8 = pnand %p3037_p4, %p4345_p10  ;;  %p3045_p11 = scmp.lt.s32.totalorder %s3043_s3, %s3036_s19 }
 0x180   : > { %p3040_p6 = pneg %p3039_p8  ;;  %p3046_p13 = por %p3045_p11, %p3044_p12 }
 0x182   : > { %p3047_p0 = pnand %p3046_p13, %p3040_p6 }
 0x184   : > { %3050 = shalt.err (!%p3047_p0)
}
 0x185   : > { %2516 = dma.hbm_to_vmem [thread:$0]  (!%p4346_p9), %s3703_s20, 1024, %s3706_s22, %s3548_s9, %s4338_s8, %s4348_s14, %s4347_s5  }
 0x186   : > { %s4350_s13 = sld [smem:[#allocation44_spill]] }
 0x18c   : > { %p4351_p10 = scmp.ne.s32.totalorder %s4350_s13, 0 }
 0x18e   : > { %637 = sbr.rel (%p4351_p10) target bundleno = 2063 (0x80f), region = 72 }
 0x195   : > { %p4352_p1 = scmp.eq.s32.totalorder %s3327_s21, 0 }
 0x197   : > { %3128 = dma.done.wait (%p4352_p1), [#allocation8], 512   ;;  %p4353_p5 = pmov %p4352_p1 }
 0x198   : > { %p4354_p7 = pmov %p4352_p1 }
 0x199   : > { %3130 = vsyncadd (%p4353_p5), [#allocation8], 4294966784 }
 0x19a   : > { %3132 = dma.done.wait (%p4354_p7), [#allocation11], 4112   ;;  %p4355_p3 = pmov %p4352_p1 }
 0x19b   : > { %p4356_p2 = pmov %p4352_p1 }
 0x19c   : > { %3134 = vsyncadd (%p4355_p3), [#allocation11], 4294963184 }
 0x19d   : > { %3136 = dma.done.wait (%p4356_p2), [#allocation14], 2064   ;;  %p4357_p9 = pmov %p4352_p1 }
 0x19e   : > { %p4358_p4 = pmov %p4352_p1 }
 0x19f   : > { %3138 = vsyncadd (%p4357_p9), [#allocation14], 4294965232 }
 0x1a0   : > { %3140 = dma.done.wait (%p4358_p4), [#allocation17], 2064   ;;  %p4359_p8 = pmov %p4352_p1 }
 0x1a1   : > { %p4360_p6 = pmov %p4352_p1 }
 0x1a2   : > { %3142 = vsyncadd (%p4359_p8), [#allocation17], 4294965232 }
 0x1a3   : > { %3144 = dma.done.wait (%p4360_p6), [#allocation20], 2064   ;;  %p4361_p12 = pmov %p4352_p1 }
 0x1a4   : > { %s675_s9 = sand.u32 1, %s3327_s21   ;;  %s677_s12 = sand.u32 1, %s3169_s30  }
 0x1a5   : > { %3146 = vsyncadd (%p4361_p12), [#allocation20], 4294965232  ;;  %s2046_s8 = sshll.u32 %s677_s12, 6  ;;  %s676_s5 = scalar_lea.sflag [#allocation23], %s675_s9 }
 0x1a6   : > { %s3757_s14 = scalar_lea.vmem [#allocation22], %s2046_s8  ;;  %p4362_p11 = scmp.ne.s32.totalorder %s4331_s28, 0 }
 0x1a8   : > { %3148 = dma.done.wait (%p4362_p11), %s676_s5, 2048  }
 0x1a9   : > { %3150 = vsyncadd (%p4362_p11), %s676_s5, 4294965248  ;;  %s3763_s15 = scalar_lea.vmem [#allocation24], %s2046_s8  ;;  %s694_s25 = scalar_lea.sflag [#allocation26], %s675_s9 }
 0x1aa   : > { %s3765_s20 = scalar_lea.vmem [#allocation25], %s2046_s8 }
 0x1ab   : > { %3152 = dma.done.wait (%p4362_p11), %s694_s25, 2048  }
 0x1ac   : > { %3154 = vsyncadd (%p4362_p11), %s694_s25, 4294965248  ;;  %s3771_s17 = scalar_lea.vmem [#allocation27], %s2046_s8  ;;  %s4363_s22 = sld [smem:[#allocation41_spill]] }
 0x1b2   : > { %p2050_p13 = scmp.ne.s32.totalorder %s4363_s22, 0 }
 0x1b3   : > { %v796_v0 = vld [vmem:[#allocation10 + $0x80] sm:$0xff] (!%p2050_p13)  ;;  %v797_v1 = vld [vmem:[#allocation10 + $0x88] sm:$0xff] (!%p2050_p13)  ;;  %v798_v5 = vld [vmem:[#allocation10 + $0x90] sm:$0xff] (!%p2050_p13)  ;;  %vm1196_vm0 = vcmask (!%p2050_p13), 7168  }
 0x1b4   : > { %775 = sbr.rel (%p2050_p13) target bundleno = 1345 (0x541), region = 128  ;;  %v780_v2 = vld [vmem:[#allocation10] sm:$0xff] (!%p2050_p13)  ;;  %v2296_v3 = vpack.c.bf16 (!%p2050_p13), %v797_v1, %v796_v0  ;;  %v781_v4 = vld [vmem:[#allocation10 + $0x8] sm:$0xff] (!%p2050_p13)  ;;  %v799_v6 = vld [vmem:[#allocation10 + $0x98] sm:$0xff] (!%p2050_p13) }
 0x1b5   : > { %v2298_v7 = vpack.c.bf16 (!%p2050_p13), %v781_v4, %v780_v2  ;;  %v2300_v8 = vpack.c.bf16 (!%p2050_p13), %v799_v6, %v798_v5  ;;  %v782_v9 = vld [vmem:[#allocation10 + $0x10] sm:$0xff] (!%p2050_p13)  ;;  %v783_v10 = vld [vmem:[#allocation10 + $0x18] sm:$0xff] (!%p2050_p13)  ;;  %v800_v11 = vld [vmem:[#allocation10 + $0xa0] sm:$0xff] (!%p2050_p13) }
 0x1b6   : > { %2297 = vmatprep.subr.bf16.mxu0 (!%p2050_p13), %v2296_v3  ;;  %v801_v12 = vld [vmem:[#allocation10 + $0xa8] sm:$0xff] (!%p2050_p13)  ;;  %v2302_v13 = vpack.c.bf16 (!%p2050_p13), %v783_v10, %v782_v9  ;;  %v784_v15 = vld [vmem:[#allocation10 + $0x20] sm:$0xff] (!%p2050_p13)  ;;  %v802_v17 = vld [vmem:[#allocation10 + $0xb0] sm:$0xff] (!%p2050_p13) }
 0x1b7   : > { %2299 = vmatpush3.bf16.msra.mxu0 (!%p2050_p13), %v2298_v7  ;;  %v2304_v14 = vpack.c.bf16 (!%p2050_p13), %v801_v12, %v800_v11  ;;  %v785_v16 = vld [vmem:[#allocation10 + $0x28] sm:$0xff] (!%p2050_p13)  ;;  %v803_v18 = vld [vmem:[#allocation10 + $0xb8] sm:$0xff] (!%p2050_p13)  ;;  %v786_v21 = vld [vmem:[#allocation10 + $0x30] sm:$0xff] (!%p2050_p13) }
 0x1b8   : > { %2301 = vmatprep.subr.bf16.mxu0 (!%p2050_p13), %v2300_v8  ;;  %v2306_v19 = vpack.c.bf16 (!%p2050_p13), %v785_v16, %v784_v15  ;;  %v2308_v20 = vpack.c.bf16 (!%p2050_p13), %v803_v18, %v802_v17  ;;  %v787_v22 = vld [vmem:[#allocation10 + $0x38] sm:$0xff] (!%p2050_p13)  ;;  %v804_v23 = vld [vmem:[#allocation10 + $0xc0] sm:$0xff] (!%p2050_p13)  ;;  %v805_v24 = vld [vmem:[#allocation10 + $0xc8] sm:$0xff] (!%p2050_p13) }
 0x1b9   : > { %v777_v25 = vld [vmem:[#allocation7 + $0x8] sm:$0xff] (!%p2050_p13)  ;;  %v788_v26 = vld [vmem:[#allocation10 + $0x40] sm:$0xff] (!%p2050_p13)  ;;  %v2310_v27 = vpack.c.bf16 (!%p2050_p13), %v787_v22, %v786_v21  ;;  %v898_v30 = vld [vmem:[#allocation13 + $0x10] sm:$0xff] (!%p2050_p13)  ;;  %v2312_v31 = vpack.c.bf16 (!%p2050_p13), %v805_v24, %v804_v23 }
 0x1ba   : > { %883 = vmatprep.mubr.f32.mxu0 (!%p2050_p13), %v777_v25  ;;  %v896_v28 = vld [vmem:[#allocation13] sm:$0xff] (!%p2050_p13)  ;;  %v897_v29 = vld [vmem:[#allocation13 + $0x8] sm:$0xff] (!%p2050_p13)  ;;  %v899_v35 = vld [vmem:[#allocation13 + $0x18] sm:$0xff] (!%p2050_p13) }
 0x1bb   : > { %2303 = vmatpush3.bf16.msra.mxu0 %v2302_v13  ;;  %v789_v32 = vld [vmem:[#allocation10 + $0x48] sm:$0xff]  ;;  %v806_v33 = vld [vmem:[#allocation10 + $0xd0] sm:$0xff]  ;;  %v2328_v34 = vpack.c.bf16 %v897_v29, %v896_v28  ;;  %v807_v36 = vld [vmem:[#allocation10 + $0xd8] sm:$0xff]  ;;  %v2332_v37 = vpack.c.bf16 %v899_v35, %v898_v30 }
 0x1bc   : > { %2305 = vmatprep.subr.bf16.mxu0 %v2304_v14  ;;  %v900_v38 = vld [vmem:[#allocation13 + $0x20] sm:$0xff]  ;;  %v901_v39 = vld [vmem:[#allocation13 + $0x28] sm:$0xff]  ;;  %v2314_v40 = vpack.c.bf16 %v789_v32, %v788_v26  ;;  %v2316_v41 = vpack.c.bf16 %v807_v36, %v806_v33  ;;  %v791_v43 = vld [vmem:[#allocation10 + $0x58] sm:$0xff] }
 0x1bd   : > { %2329 = vmatprep.subr.bf16.mxu1 %v2328_v34  ;;  %v790_v42 = vld [vmem:[#allocation10 + $0x50] sm:$0xff]  ;;  %v808_v44 = vld [vmem:[#allocation10 + $0xe0] sm:$0xff]  ;;  %v2336_v45 = vpack.c.bf16 %v901_v39, %v900_v38  ;;  %v809_v46 = vld [vmem:[#allocation10 + $0xe8] sm:$0xff] }
 0x1be   : > { %2331 = vmatpush3.bf16.msra.mxu1 %v2328_v34  ;;  %v902_v47 = vld [vmem:[#allocation13 + $0x30] sm:$0xff]  ;;  %v903_v48 = vld [vmem:[#allocation13 + $0x38] sm:$0xff]  ;;  %v2318_v49 = vpack.c.bf16 %v791_v43, %v790_v42  ;;  %v2320_v50 = vpack.c.bf16 %v809_v46, %v808_v44  ;;  %v793_v52 = vld [vmem:[#allocation10 + $0x68] sm:$0xff] }
 0x1bf   : > { %2307 = vmatpush3.bf16.msra.mxu0 %v2306_v19  ;;  %2333 = vmatprep.subr.bf16.mxu1 %v2332_v37  ;;  %v792_v51 = vld [vmem:[#allocation10 + $0x60] sm:$0xff]  ;;  %v810_v53 = vld [vmem:[#allocation10 + $0xf0] sm:$0xff]  ;;  %v2340_v54 = vpack.c.bf16 %v903_v48, %v902_v47  ;;  %v811_v55 = vld [vmem:[#allocation10 + $0xf8] sm:$0xff] }
 0x1c0   : > { %2309 = vmatprep.subr.bf16.mxu0 %v2308_v20  ;;  %v904_v56 = vld [vmem:[#allocation13 + $0x40] sm:$0xff]  ;;  %v905_v57 = vld [vmem:[#allocation13 + $0x48] sm:$0xff]  ;;  %v2322_v58 = vpack.c.bf16 %v793_v52, %v792_v51  ;;  %v2324_v59 = vpack.c.bf16 %v811_v55, %v810_v53  ;;  %v795_v61 = vld [vmem:[#allocation10 + $0x78] sm:$0xff] }
 0x1c1   : > { %v794_v60 = vld [vmem:[#allocation10 + $0x70] sm:$0xff]  ;;  %v2344_v62 = vpack.c.bf16 %v905_v57, %v904_v56  ;;  %v776_v0 = vld [vmem:[#allocation7] sm:$0xff]  ;;  %v779_v1 = vld [vmem:[#allocation7 + $0x18] sm:$0xff] }
 0x1c2   : > { %2335 = vmatpush3.bf16.msra.mxu1 %v2332_v37  ;;  %v2326_v63 = vpack.c.bf16 %v795_v61, %v794_v60  ;;  %v778_v2 = vld [vmem:[#allocation7 + $0x10] sm:$0xff]  ;;  %v907_v4 = vld [vmem:[#allocation13 + $0x58] sm:$0xff]  ;;  %v908_v6 = vld [vmem:[#allocation13 + $0x60] sm:$0xff] }
 0x1c3   : > { %2311 = vmatpush3.bf16.msra.mxu0 %v2310_v27  ;;  %2337 = vmatprep.subr.bf16.mxu1 %v2336_v45  ;;  %v906_v3 = vld [vmem:[#allocation13 + $0x50] sm:$0xff]  ;;  %v909_v7 = vld [vmem:[#allocation13 + $0x68] sm:$0xff]  ;;  %v911_v10 = vld [vmem:[#allocation13 + $0x78] sm:$0xff] }
 0x1c4   : > { %2313 = vmatprep.subr.bf16.mxu0 %v2312_v31  ;;  %v2348_v5 = vpack.c.bf16 %v907_v4, %v906_v3  ;;  %v2352_v8 = vpack.c.bf16 %v909_v7, %v908_v6  ;;  %v910_v9 = vld [vmem:[#allocation13 + $0x70] sm:$0xff]  ;;  %v996_v12 = vld [vmem:[#allocation16] sm:$0xff]  ;;  %v999_v16 = vld [vmem:[#allocation16 + $0x18] sm:$0xff] }
 0x1c5   : > { %v2356_v11 = vpack.c.bf16 %v911_v10, %v910_v9  ;;  %v997_v13 = vld [vmem:[#allocation16 + $0x8] sm:$0xff]  ;;  %v998_v14 = vld [vmem:[#allocation16 + $0x10] sm:$0xff]  ;;  %v1000_v18 = vld [vmem:[#allocation16 + $0x20] sm:$0xff] }
 0x1c6   : > { %2339 = vmatpush3.bf16.msra.mxu1 %v2336_v45  ;;  %v2360_v15 = vpack.c.bf16 %v997_v13, %v996_v12  ;;  %v2364_v17 = vpack.c.bf16 %v999_v16, %v998_v14  ;;  %v1001_v19 = vld [vmem:[#allocation16 + $0x28] sm:$0xff]  ;;  %v1002_v21 = vld [vmem:[#allocation16 + $0x30] sm:$0xff]  ;;  %v1003_v22 = vld [vmem:[#allocation16 + $0x38] sm:$0xff] }
 0x1c7   : > { %2315 = vmatpush3.bf16.msra.mxu0 %v2314_v40  ;;  %2341 = vmatprep.subr.bf16.mxu1 %v2340_v54  ;;  %v2368_v20 = vpack.c.bf16 %v1001_v19, %v1000_v18  ;;  %v2372_v23 = vpack.c.bf16 %v1003_v22, %v1002_v21  ;;  %v1004_v24 = vld [vmem:[#allocation16 + $0x40] sm:$0xff]  ;;  %v1005_v25 = vld [vmem:[#allocation16 + $0x48] sm:$0xff]  ;;  %v1006_v27 = vld [vmem:[#allocation16 + $0x50] sm:$0xff]  ;;  %v3207_v21 = vmov -inf   ;;  %v3208_v22 = vmov 0.0  }
 0x1c8   : > { %2317 = vmatprep.subr.bf16.mxu0 %v2316_v41  ;;  %v2376_v26 = vpack.c.bf16 %v1005_v25, %v1004_v24  ;;  %v1007_v28 = vld [vmem:[#allocation16 + $0x58] sm:$0xff]  ;;  %v1008_v30 = vld [vmem:[#allocation16 + $0x60] sm:$0xff]  ;;  %v1009_v31 = vld [vmem:[#allocation16 + $0x68] sm:$0xff]  ;;  %1197 = vst.msk [vmem:[#allocation3] sm:$0xff] %vm1196_vm0, %v3207_v21 }
 0x1c9   : > { %v2380_v29 = vpack.c.bf16 %v1007_v28, %v1006_v27  ;;  %v2384_v32 = vpack.c.bf16 %v1009_v31, %v1008_v30  ;;  %v2051_v35 = vld [vmem:[#allocation12] ss:$0 sm:$0xff]  ;;  %v1010_v44 = vld [vmem:[#allocation16 + $0x70] sm:$0xff]  ;;  %v1096_v47 = vld [vmem:[#allocation19] sm:$0xff]  ;;  %1198 = vst.msk [vmem:[#allocation3 + $0x8] sm:$0xff] %vm1196_vm0, %v3207_v21 }
 0x1ca   : > { %2343 = vmatpush3.bf16.msra.mxu1 %v2340_v54  ;;  %v1011_v45 = vld [vmem:[#allocation16 + $0x78] sm:$0xff]  ;;  %v1097_v48 = vld [vmem:[#allocation19 + $0x8] sm:$0xff]  ;;  %v1100_v53 = vld [vmem:[#allocation19 + $0x20] sm:$0xff]  ;;  %1199 = vst.msk [vmem:[#allocation4] sm:$0xff] %vm1196_vm0, %v3208_v22 }
 0x1cb   : > { %2319 = vmatpush3.bf16.msra.mxu0 %v2318_v49  ;;  %2345 = vmatprep.subr.bf16.mxu1 %v2344_v62  ;;  %v2388_v46 = vpack.c.bf16 %v1011_v45, %v1010_v44  ;;  %v1098_v49 = vld [vmem:[#allocation19 + $0x10] sm:$0xff]  ;;  %v1099_v51 = vld [vmem:[#allocation19 + $0x18] sm:$0xff]  ;;  %v1101_v54 = vld [vmem:[#allocation19 + $0x28] sm:$0xff]  ;;  %1200 = vst.msk [vmem:[#allocation4 + $0x8] sm:$0xff] %vm1196_vm0, %v3208_v22 }
 0x1cc   : > { %2321 = vmatprep.subr.bf16.mxu0 %v2320_v50  ;;  %v2392_v50 = vpack.c.bf16 %v1097_v48, %v1096_v47  ;;  %v2396_v52 = vpack.c.bf16 %v1099_v51, %v1098_v49  ;;  %v2400_v55 = vpack.c.bf16 %v1101_v54, %v1100_v53  ;;  %v1102_v56 = vld [vmem:[#allocation19 + $0x30] sm:$0xff]  ;;  %v1103_v57 = vld [vmem:[#allocation19 + $0x38] sm:$0xff]  ;;  %v1105_v60 = vld [vmem:[#allocation19 + $0x48] sm:$0xff]  ;;  %1201 = vst.msk [vmem:[#allocation5] sm:$0xff] %vm1196_vm0, %v3207_v21 }
 0x1cd   : > { %v2052_v4 = vld [vmem:[#allocation15] ss:$0 sm:$0xff]  ;;  %v2053_v14 = vld [vmem:[#allocation18] ss:$0 sm:$0xff]  ;;  %1202 = vst.msk [vmem:[#allocation5 + $0x8] sm:$0xff] %vm1196_vm0, %v3207_v21  ;;  %1203 = vst.msk [vmem:[#allocation6] sm:$0xff] %vm1196_vm0, %v3208_v22 }
 0x1ce   : > { %2347 = vmatpush3.bf16.msra.mxu1 %v2344_v62  ;;  %v1106_v62 = vld [vmem:[#allocation19 + $0x50] sm:$0xff]  ;;  %v1111_v12 = vld [vmem:[#allocation19 + $0x78] sm:$0xff]  ;;  %1204 = vst.msk [vmem:[#allocation6 + $0x8] sm:$0xff] %vm1196_vm0, %v3208_v22 }
 0x1cf   : > { %2323 = vmatpush3.bf16.msra.mxu0 %v2322_v58  ;;  %2349 = vmatprep.subr.bf16.mxu1 %v2348_v5  ;;  %v2404_v58 = vpack.c.bf16 %v1103_v57, %v1102_v56 }
 0x1d0   : > { %2325 = vmatprep.subr.bf16.mxu0 %v2324_v59  ;;  %v1104_v59 = vld [vmem:[#allocation19 + $0x40] sm:$0xff] }
 0x1d1   : > { %v2408_v61 = vpack.c.bf16 %v1105_v60, %v1104_v59 }
 0x1d2   : > { %2351 = vmatpush3.bf16.msra.mxu1 %v2348_v5 }
 0x1d3   : > { %2327 = vmatpush3.bf16.msra.mxu0 %v2326_v63  ;;  %2353 = vmatprep.subr.bf16.mxu1 %v2352_v8  ;;  %v1107_v63 = vld [vmem:[#allocation19 + $0x58] sm:$0xff] }
 0x1d4   : > { %2361 = vmatprep.subr.bf16.mxu0 %v2360_v15 }
 0x1d6   : > { %884 = vmatmul.mubr.f32.vlgmr.msra.gmra.mrb[0].mxu0 %v776_v0  ;;  %2355 = vmatpush3.bf16.msra.mxu1 %v2352_v8  ;;  %v2412_v0 = vpack.c.bf16 %v1107_v63, %v1106_v62 }
 0x1d7   : > { %888 = vmatprep.mubr.f32.mxu0 %v779_v1  ;;  %2357 = vmatprep.subr.bf16.mxu1 %v2356_v11  ;;  %v1108_v1 = vld [vmem:[#allocation19 + $0x60] sm:$0xff] }
 0x1d8   : > { %2363 = vmatpush3.bf16.msra.mxu0 %v2360_v15 }
 0x1d9   : > { %2365 = vmatprep.subr.bf16.mxu0 %v2364_v17 }
 0x1da   : > { %889 = vmatmul.mubr.f32.gmra.mrb[2].mxu0 %v778_v2  ;;  %2359 = vmatpush3.bf16.msra.mxu1 %v2356_v11  ;;  %v1109_v2 = vld [vmem:[#allocation19 + $0x68] sm:$0xff]  ;;  %v1110_v11 = vld [vmem:[#allocation19 + $0x70] sm:$0xff] }
 0x1db   : > { %2393 = vmatprep.subr.bf16.mxu1 %v2392_v50  ;;  %v2416_v3 = vpack.c.bf16 %v1109_v2, %v1108_v1  ;;  %v2420_v13 = vpack.c.bf16 %v1111_v12, %v1110_v11 }
 0x1dc   : > { %2367 = vmatpush3.bf16.msra.mxu0 %v2364_v17 }
 0x1dd   : > { %2369 = vmatprep.subr.bf16.mxu0 %v2368_v20 }
 0x1e0   : > { %2371 = vmatpush3.bf16.msra.mxu0 %v2368_v20 }
 0x1e1   : > { %2373 = vmatprep.subr.bf16.mxu0 %v2372_v23 }
 0x1e4   : > { %2375 = vmatpush3.bf16.msra.mxu0 %v2372_v23  ;;  %v2054_v23 = vld [vmem:[#allocation21] ss:$0 sm:$0xff] }
 0x1e5   : > { %2377 = vmatprep.subr.bf16.mxu0 %v2376_v26 }
 0x1e8   : > { %2379 = vmatpush3.bf16.msra.mxu0 %v2376_v26 }
 0x1e9   : > { %2381 = vmatprep.subr.bf16.mxu0 %v2380_v29 }
 0x1ec   : > { %2383 = vmatpush3.bf16.msra.mxu0 %v2380_v29 }
 0x1ed   : > { %2385 = vmatprep.subr.bf16.mxu0 %v2384_v32 }
 0x1f0   : > { %2387 = vmatpush3.bf16.msra.mxu0 %v2384_v32 }
 0x1f1   : > { %2389 = vmatprep.subr.bf16.mxu0 %v2388_v46 }
 0x1f4   : > { %2391 = vmatpush3.bf16.msra.mxu0 %v2388_v46 }
 0x2a9   : > { %v2131_v33 = vpop.f32.mrb[0].mxu0 }
 0x2aa   : > { %v2132_v34 = vpop.f32.mrb[1].mxu0 }
 0x2ab   : > { %v2133_v36 = vadd.f32 %v2132_v34, %v2131_v33 }
 0x2ad   : > { %v2134_v37 = vpop.f32.mrb[2].mxu0  ;;  %v886_v38 = vadd.f32 %v2133_v36, %v2051_v35 }
 0x2ae   : > { %v2135_v39 = vpop.f32.mrb[3].mxu0 }
 0x2af   : > { %v2136_v40 = vadd.f32 %v2135_v39, %v2134_v37  ;;  %v894_v41 = vmax.f32 %v886_v38, 0.0 }
 0x2b1   : > { %v891_v42 = vadd.f32 %v2136_v40, %v2051_v35  ;;  %2223 = vmatprep.mubr.f32.mxu1 %v894_v41 }
 0x2b3   : > { %v895_v43 = vmax.f32 %v891_v42, 0.0 }
 0x2b5   : > { %2224 = vmatmul.mubr.f32.vlgmr.msra.gmra.mrb[0].mxu1 %v895_v43 }
 0x2b6   : > { %2395 = vmatpush3.bf16.msra.mxu1 %v2392_v50 }
 0x2b7   : > { %2397 = vmatprep.subr.bf16.mxu1 %v2396_v52 }
 0x2ba   : > { %2399 = vmatpush3.bf16.msra.mxu1 %v2396_v52 }
 0x2bb   : > { %2401 = vmatprep.subr.bf16.mxu1 %v2400_v55 }
 0x2be   : > { %2403 = vmatpush3.bf16.msra.mxu1 %v2400_v55 }
 0x2bf   : > { %2405 = vmatprep.subr.bf16.mxu1 %v2404_v58 }
 0x2c2   : > { %2407 = vmatpush3.bf16.msra.mxu1 %v2404_v58 }
 0x2c3   : > { %2409 = vmatprep.subr.bf16.mxu1 %v2408_v61 }
 0x2c6   : > { %2411 = vmatpush3.bf16.msra.mxu1 %v2408_v61 }
 0x2c7   : > { %2413 = vmatprep.subr.bf16.mxu1 %v2412_v0 }
 0x2ca   : > { %2415 = vmatpush3.bf16.msra.mxu1 %v2412_v0 }
 0x2cb   : > { %2417 = vmatprep.subr.bf16.mxu1 %v2416_v3 }
 0x2ce   : > { %2419 = vmatpush3.bf16.msra.mxu1 %v2416_v3 }
 0x2cf   : > { %2421 = vmatprep.subr.bf16.mxu1 %v2420_v13 }
 0x2d2   : > { %2423 = vmatpush3.bf16.msra.mxu1 %v2420_v13 }
 0x388   : > { %v2225_v5 = vpop.f32.mrb[0].mxu1 }
 0x389   : > { %v991_v6 = vadd.f32 %v2225_v5, %v2052_v4  ;;  %v985_v7 = vpop.f32.mrb[1].mxu1 }
 0x38a   : > { %v986_v8 = vadd.f32 %v2052_v4, %v985_v7 }
 0x38b   : > { %v995_v10 = vmax.f32 %v991_v6, 0.0 }
 0x38c   : > { %v994_v9 = vmax.f32 %v986_v8, 0.0 }
 0x38e   : > { %2258 = vmatprep.mubr.f32.mxu0 %v994_v9 }
 0x38f   : > { %2259 = vmatmul.mubr.f32.vlgmr.msra.gmra.mrb[4].mxu0 %v995_v10 }
 0x462   : > { %v2260_v15 = vpop.f32.mrb[4].mxu0 }
 0x463   : > { %v1091_v16 = vadd.f32 %v2260_v15, %v2053_v14  ;;  %v1085_v17 = vpop.f32.mrb[5].mxu0 }
 0x464   : > { %v1086_v18 = vadd.f32 %v2053_v14, %v1085_v17 }
 0x465   : > { %v1095_v20 = vmax.f32 %v1091_v16, 0.0 }
 0x466   : > { %v1094_v19 = vmax.f32 %v1086_v18, 0.0 }
 0x468   : > { %2293 = vmatprep.mubr.f32.mxu1 %v1094_v19 }
 0x469   : > { %2294 = vmatmul.mubr.f32.vlgmr.msra.gmra.mrb[2].mxu1 %v1095_v20 }
 0x53c   : > { %v2295_v24 = vpop.f32.mrb[2].mxu1 }
 0x53d   : > { %v1191_v25 = vadd.f32 %v2295_v24, %v2054_v23  ;;  %v1185_v26 = vpop.f32.mrb[3].mxu1 }
 0x53e   : > { %v1186_v27 = vadd.f32 %v2054_v23, %v1185_v26 }
 0x53f   : > { %1195 = vst [vmem:[#allocation2 + $0x8] sm:$0xff] %v1191_v25 }
 0x540   : > { %1194 = vst [vmem:[#allocation2] sm:$0xff] %v1186_v27 }
 0x541 PF: > { %v3209_v29 = vmov 1   ;;  %v3210_v30 = vmov 0   ;;  %v3211_v32 = vmov 2   ;;  %v3212_v33 = vmov 3   ;;  %v1213_v37 = vld [vmem:[%s3763_s15] sm:$0xff]  ;;  %v1214_v38 = vld [vmem:[%s3763_s15 + $0x8] sm:$0xff] }
 0x542   : > { %2618 = vset.pattern.permute.xlu0 %v3209_v29  ;;  %2619 = vset.pattern.permute.xlu1 %v3210_v30  ;;  %v3213_v34 = vmov 4   ;;  %v3214_v35 = vmov 5   ;;  %v3215_v36 = vmov 6   ;;  %v1215_v39 = vld [vmem:[%s3763_s15 + $0x10] sm:$0xff]  ;;  %v1216_v40 = vld [vmem:[%s3763_s15 + $0x18] sm:$0xff]  ;;  %v1239_v41 = vmul.f32 2.0, %v1213_v37 }
 0x543   : > { %v1217_v42 = vld [vmem:[%s3763_s15 + $0x20] sm:$0xff]  ;;  %v1222_v44 = vld [vmem:[%s3765_s20 + $0x8] sm:$0xff]  ;;  %v1240_v45 = vmul.f32 2.0, %v1214_v38  ;;  %v1241_v46 = vmul.f32 2.0, %v1215_v39  ;;  %v1223_v48 = vld [vmem:[%s3765_s20 + $0x10] sm:$0xff]  ;;  %v1242_v49 = vmul.f32 2.0, %v1216_v40  ;;  %v1521_v15 = vlaneseq }
 0x544   : > { %v1221_v43 = vld [vmem:[%s3765_s20] sm:$0xff]  ;;  %v1218_v47 = vld [vmem:[%s3763_s15 + $0x28] sm:$0xff]  ;;  %v1219_v50 = vld [vmem:[%s3763_s15 + $0x30] sm:$0xff]  ;;  %v1243_v53 = vmul.f32 2.0, %v1217_v42  ;;  %v3216_v5 = vmov 0.0   ;;  %s4364_s28 = sld [smem:[#allocation41_spill]] }
 0x545   : > { %v1220_v51 = vld [vmem:[%s3763_s15 + $0x38] sm:$0xff]  ;;  %v3786_v54 = vadd.f32 %v1239_v41, %v1221_v43  ;;  %v1225_v55 = vld [vmem:[%s3765_s20 + $0x20] sm:$0xff]  ;;  %v1244_v56 = vmul.f32 2.0, %v1218_v47  ;;  %v3789_v57 = vadd.f32 %v1240_v45, %v1222_v44  ;;  %v3791_v58 = vadd.f32 %v1241_v46, %v1223_v48  ;;  %v1226_v59 = vld [vmem:[%s3765_s20 + $0x28] sm:$0xff] }
 0x546   : > { %v1238_v31 = vld [vmem:[#allocation2 + $0x8] sm:$0xff]  ;;  %v1224_v52 = vld [vmem:[%s3765_s20 + $0x18] sm:$0xff]  ;;  %v1245_v60 = vmul.f32 2.0, %v1219_v50  ;;  %v1246_v61 = vmul.f32 2.0, %v1220_v51  ;;  %v3798_v1 = vadd.f32 %v1243_v53, %v1225_v55  ;;  %v3929_v41 = vld [vmem:[%s3757_s14 + $0x8] sm:$0xff] }
 0x547   : > { %v1237_v28 = vld [vmem:[#allocation2] sm:$0xff]  ;;  %v3794_v62 = vadd.f32 %v1242_v49, %v1224_v52  ;;  %v1227_v63 = vld [vmem:[%s3765_s20 + $0x30] sm:$0xff]  ;;  %v1228_v0 = vld [vmem:[%s3765_s20 + $0x38] sm:$0xff]  ;;  %vm1255_vm1 = vcmp.eq.f32.partialorder %v3786_v54, 0.0  ;;  %v3801_v2 = vadd.f32 %v1244_v56, %v1226_v59  ;;  %vm1256_vm2 = vcmp.eq.f32.partialorder %v3789_v57, 0.0 }
 0x548   : > { %1353 = vperm.xlu1 %2619, %v1237_v28   ;;  %1378 = vperm.xlu0 %2618, %v1237_v28   ;;  %vm1257_vm3 = vcmp.eq.f32.partialorder %v3791_v58, 0.0  ;;  %v3805_v3 = vadd.f32 %v1245_v60, %v1227_v63  ;;  %v3807_v4 = vadd.f32 %v1246_v61, %v1228_v0  ;;  %v3811_v6 = vsel %vm1255_vm1, 1.0, %v3216_v5  ;;  %v3932_v42 = vld [vmem:[%s3757_s14 + $0x10] sm:$0xff]  ;;  %v3955_v47 = vld [vmem:[%s3757_s14 + $0x18] sm:$0xff]  ;;  %v3958_v48 = vld [vmem:[%s3757_s14 + $0x20] sm:$0xff] }
 0x549   : > { %vm1258_vm4 = vcmp.eq.f32.partialorder %v3794_v62, 0.0  ;;  %vm1259_vm5 = vcmp.eq.f32.partialorder %v3798_v1, 0.0  ;;  %v3815_v7 = vsel %vm1256_vm2, 1.0, %v3216_v5  ;;  %v3818_v8 = vsel %vm1257_vm3, 1.0, %v3216_v5  ;;  %v3981_v53 = vld [vmem:[%s3757_s14 + $0x28] sm:$0xff]  ;;  %v3987_v55 = vld [vmem:[%s3757_s14 + $0x38] sm:$0xff] }
 0x54a   : > { %vm1260_vm6 = vcmp.eq.f32.partialorder %v3801_v2, 0.0  ;;  %vm1283_vm7 = vcmp.eq.f32.partialorder %v3798_v1, 1.0  ;;  %v3823_v9 = vsel %vm1258_vm4, 1.0, %v3216_v5  ;;  %vm1261_vm8 = vcmp.eq.f32.partialorder %v3805_v3, 0.0  ;;  %s2087_s7 = sshll.u32 %s4364_s28, 9  ;;  %p2088_p0 = scmp.ne.s32.totalorder %s4364_s28, 1 }
 0x54b   : > { %vm1262_vm9 = vcmp.eq.f32.partialorder %v3807_v4, 0.0  ;;  %vm1279_vm10 = vcmp.eq.f32.partialorder %v3786_v54, 1.0  ;;  %v3829_v10 = vsel %vm1259_vm5, 1.0, %v3216_v5  ;;  %vm1284_vm11 = vcmp.eq.f32.partialorder %v3801_v2, 1.0 }
 0x54c   : > { %1358 = vperm.xlu1 %2619, %v1238_v31   ;;  %1382 = vperm.xlu0 %2618, %v1238_v31   ;;  %vm1280_vm12 = vcmp.eq.f32.partialorder %v3789_v57, 1.0  ;;  %vm1281_vm13 = vcmp.eq.f32.partialorder %v3791_v58, 1.0  ;;  %v3835_v11 = vsel %vm1260_vm6, 1.0, %v3216_v5  ;;  %vm1285_vm14 = vcmp.eq.f32.partialorder %v3805_v3, 1.0 }
 0x54d   : > { %vm1286_vm15 = vcmp.eq.f32.partialorder %v3807_v4, 1.0  ;;  %v3840_v12 = vsel %vm1283_vm7, 1.0, %v3216_v5  ;;  %v3843_v13 = vsel %vm1261_vm8, 1.0, %v3216_v5  ;;  %v3846_v14 = vsel %vm1262_vm9, 1.0, %v3216_v5 }
 0x54e   : > { %vm1282_vm0 = vcmp.eq.f32.partialorder %v3794_v62, 1.0  ;;  %v3850_v16 = vsel %vm1284_vm11, 1.0, %v3216_v5  ;;  %vm1303_vm1 = vcmp.eq.f32.partialorder %v3786_v54, 2.0  ;;  %vm1304_vm2 = vcmp.eq.f32.partialorder %v3789_v57, 2.0 }
 0x54f   : > { %vm1305_vm3 = vcmp.eq.f32.partialorder %v3791_v58, 2.0  ;;  %v3856_v17 = vsel %vm1285_vm14, 1.0, %v3216_v5  ;;  %v3859_v18 = vsel %vm1286_vm15, 1.0, %v3216_v5  ;;  %v3864_v19 = vsel %vm1279_vm10, 1.0, %v3216_v5 }
 0x550   : > { %2621 = vset.pattern.permute.xlu1 %v3211_v32  ;;  %2620 = vset.pattern.permute.xlu0 %v3211_v32  ;;  %vm1306_vm4 = vcmp.eq.f32.partialorder %v3794_v62, 2.0  ;;  %v3872_v22 = vsel %vm1280_vm12, 1.0, %v3216_v5  ;;  %v3877_v23 = vsel %vm1281_vm13, 1.0, %v3216_v5  ;;  %v3880_v24 = vsel %vm1282_vm0, 1.0, %v3216_v5 }
 0x551   : > { %1398 = vperm.xlu1 %2621, %v1238_v31   ;;  %1394 = vperm.xlu0 %2620, %v1237_v28   ;;  %vm1307_vm5 = vcmp.eq.f32.partialorder %v3798_v1, 2.0  ;;  %v3884_v25 = vsel %vm1303_vm1, 1.0, %v3216_v5  ;;  %v3887_v26 = vsel %vm1304_vm2, 1.0, %v3216_v5  ;;  %v3890_v27 = vsel %vm1305_vm3, 1.0, %v3216_v5 }
 0x552   : > { %v3893_v29 = vsel %vm1306_vm4, 1.0, %v3216_v5  ;;  %vm1308_vm6 = vcmp.eq.f32.partialorder %v3801_v2, 2.0  ;;  %vm1309_vm7 = vcmp.eq.f32.partialorder %v3805_v3, 2.0  ;;  %vm1310_vm8 = vcmp.eq.f32.partialorder %v3807_v4, 2.0 }
 0x553   : > { %vm1331_vm9 = vcmp.eq.f32.partialorder %v3798_v1, 3.0  ;;  %vm1332_vm10 = vcmp.eq.f32.partialorder %v3801_v2, 3.0  ;;  %vm1333_vm11 = vcmp.eq.f32.partialorder %v3805_v3, 3.0  ;;  %vm1334_vm12 = vcmp.eq.f32.partialorder %v3807_v4, 3.0 }
 0x554   : > { %vm1327_vm13 = vcmp.eq.f32.partialorder %v3786_v54, 3.0  ;;  %vm1328_vm14 = vcmp.eq.f32.partialorder %v3789_v57, 3.0  ;;  %vm1329_vm15 = vcmp.eq.f32.partialorder %v3791_v58, 3.0  ;;  %vm1330_vm0 = vcmp.eq.f32.partialorder %v3794_v62, 3.0  ;;  %v3984_v54 = vld [vmem:[%s3757_s14 + $0x30] sm:$0xff] }
 0x555   : > { %2622 = vset.pattern.permute.xlu1 %v3212_v33  ;;  %2623 = vset.pattern.permute.xlu0 %v3212_v33  ;;  %v3916_v37 = vsel %vm1308_vm6, 1.0, %v3216_v5  ;;  %v3921_v38 = vsel %vm1309_vm7, 1.0, %v3216_v5  ;;  %v3926_v39 = vsel %vm1310_vm8, 1.0, %v3216_v5  ;;  %v1527_v40 = vstv %s2087_s7 }
 0x556   : > { %1426 = vperm.xlu1 %2622, %v1237_v28   ;;  %1430 = vperm.xlu0 %2623, %v1238_v31   ;;  %4365 = vst [vmem:[#allocation47_spill] sm:$0xff] %v3916_v37  ;;  %4366 = vst [vmem:[#allocation48_spill] sm:$0xff] %v3921_v38  ;;  %v3937_v43 = vsel %vm1331_vm9, 1.0, %v3216_v5  ;;  %v3942_v44 = vsel %vm1332_vm10, 1.0, %v3216_v5  ;;  %v3947_v45 = vsel %vm1333_vm11, 1.0, %v3216_v5  ;;  %v3952_v46 = vsel %vm1334_vm12, 1.0, %v3216_v5 }
 0x557   : > { %4367 = vst [vmem:[#allocation49_spill] sm:$0xff] %v3926_v39  ;;  %4368 = vst [vmem:[#allocation50_spill] sm:$0xff] %v3937_v43  ;;  %v3963_v49 = vsel %vm1327_vm13, 1.0, %v3216_v5  ;;  %v3968_v50 = vsel %vm1328_vm14, 1.0, %v3216_v5  ;;  %v3973_v51 = vsel %vm1329_vm15, 1.0, %v3216_v5  ;;  %v3978_v52 = vsel %vm1330_vm0, 1.0, %v3216_v5 }
 0x558   : > { %4369 = vst [vmem:[#allocation51_spill] sm:$0xff] %v3942_v44  ;;  %4370 = vst [vmem:[#allocation52_spill] sm:$0xff] %v3947_v45 }
 0x559   : > { %4371 = vst [vmem:[#allocation53_spill] sm:$0xff] %v3952_v46  ;;  %4372 = vst [vmem:[#allocation54_spill] sm:$0xff] %v3963_v49 }
 0x55a   : > { %2624 = vset.pattern.permute.xlu1 %v3213_v34  ;;  %2625 = vset.pattern.permute.xlu0 %v3214_v35  ;;  %4373 = vst [vmem:[#allocation55_spill] sm:$0xff] %v3968_v50  ;;  %4374 = vst [vmem:[#allocation56_spill] sm:$0xff] %v3973_v51 }
 0x55b   : > { %1442 = vperm.xlu1 %2624, %v1237_v28   ;;  %1474 = vperm.xlu0 %2625, %v1237_v28   ;;  %4375 = vst [vmem:[#allocation57_spill] sm:$0xff] %v3978_v52 }
 0x55f   : > { %1446 = vperm.xlu1 %2624, %v1238_v31   ;;  %2628 = vset.pattern.permute.xlu0 %v3215_v36 }
 0x560   : > { %1494 = vperm.xlu0 %2628, %v1238_v31  }
 0x563   : > { %2626 = vset.pattern.permute.xlu1 %v3214_v35  ;;  %v3911_v35 = vld [vmem:[%s3757_s14] sm:$0xff] }
 0x564   : > { %1478 = vperm.xlu1 %2626, %v1238_v31   ;;  %2630 = vset.pattern.permute.xlu0 %v3210_v30 }
 0x568   : > { %2627 = vset.pattern.permute.xlu1 %v3215_v36 }
 0x569   : > { %1490 = vperm.xlu1 %2627, %v1237_v28   ;;  %v1522_v28 = vand.u32 127, %v1521_v15 }
 0x56b   : > { %v1523_v32 = vadd.s32 128, %v1522_v28  ;;  %v1524_v33 = vadd.s32 256, %v1522_v28  ;;  %v1525_v34 = vadd.s32 384, %v1522_v28  ;;  %v3989_v57 = vadd.s32 %v1527_v40, %v1522_v28 }
 0x56d   : > { %2629 = vset.pattern.permute.xlu1 %v3210_v30  ;;  %v3899_v30 = vsel %vm1307_vm5, 1.0, %v3216_v5  ;;  %v3991_v59 = vadd.s32 %v1527_v40, %v1523_v32  ;;  %v3993_v60 = vadd.s32 %v1527_v40, %v1524_v33  ;;  %v3995_v58 = vadd.s32 %v1527_v40, %v1525_v34 }
 0x56e   : > { %vm1532_vm1 = vcmp.lt.s32.totalorder %v3989_v57, 1000  ;;  %vm1632_vm5 = vcmask 7168  }
 0x56f   : > { %vm1533_vm2 = vcmp.lt.s32.totalorder %v3991_v59, 1000  ;;  %vm1534_vm3 = vcmp.lt.s32.totalorder %v3993_v60, 1000  ;;  %vm1535_vm4 = vcmp.lt.s32.totalorder %v3995_v58, 1000  ;;  %v1560_v60 = vld [vmem:[#allocation3] sm:$0xff] }
 0x5c7   : > { %v1354_v20 = vpop.permute.xlu1 %1353  ;;  %v3867_v21 = vpop.permute.xlu0 %1378 }
 0x5c8   : > { %v1361_v1 = vmul.f32 %v1354_v20, %v3911_v35  ;;  %v1362_v2 = vmul.f32 %v1354_v20, %v3929_v41  ;;  %v1363_v3 = vmul.f32 %v1354_v20, %v3932_v42  ;;  %v1364_v4 = vmul.f32 %v1354_v20, %v3955_v47 }
 0x5c9   : > { %v1385_v34 = vmul.f32 %v3867_v21, %v3911_v35  ;;  %v1387_v40 = vmul.f32 %v3867_v21, %v3932_v42  ;;  %v1388_v20 = vmul.f32 %v3867_v21, %v3955_v47 }
 0x5ca   : > { %v1370_v45 = vmul.f32 %v3815_v7, %v1362_v2  ;;  %v1371_v44 = vmul.f32 %v3818_v8, %v1363_v3  ;;  %v1372_v43 = vmul.f32 %v3823_v9, %v1364_v4 }
 0x5cb   : > { %v1359_v31 = vpop.permute.xlu1 %1358  ;;  %v1383_v36 = vpop.permute.xlu0 %1382 }
 0x5cc   : > { %v1389_v61 = vmul.f32 %v1383_v36, %v3958_v48  ;;  %v1390_v62 = vmul.f32 %v1383_v36, %v3981_v53  ;;  %v1391_v63 = vmul.f32 %v1383_v36, %v3984_v54  ;;  %v1392_v0 = vmul.f32 %v1383_v36, %v3987_v55 }
 0x5cd   : > { %v1365_v5 = vmul.f32 %v1359_v31, %v3958_v48  ;;  %v1366_v15 = vmul.f32 %v1359_v31, %v3981_v53  ;;  %v1367_v28 = vmul.f32 %v1359_v31, %v3984_v54  ;;  %v1368_v32 = vmul.f32 %v1359_v31, %v3987_v55 }
 0x5ce   : > { %v1386_v36 = vmul.f32 %v3867_v21, %v3929_v41  ;;  %v1369_v31 = vmul.f32 %v3811_v6, %v1361_v1 }
 0x5cf   : > { %v1373_v39 = vmul.f32 %v3829_v10, %v1365_v5  ;;  %v1374_v38 = vmul.f32 %v3835_v11, %v1366_v15  ;;  %v1375_v37 = vmul.f32 %v3843_v13, %v1367_v28  ;;  %v1376_v21 = vmul.f32 %v3846_v14, %v1368_v32 }
 0x5d0   : > { %v1399_v56 = vpop.permute.xlu1 %1398  ;;  %v1395_v33 = vpop.permute.xlu0 %1394 }
 0x5d1   : > { %v1405_v52 = vadd.f32 %v1399_v56, %v1389_v61  ;;  %v1406_v51 = vadd.f32 %v1399_v56, %v1390_v62  ;;  %v1407_v50 = vadd.f32 %v1399_v56, %v1391_v63  ;;  %v1408_v49 = vadd.f32 %v1399_v56, %v1392_v0 }
 0x5d2   : > { %v1401_v62 = vadd.f32 %v1395_v33, %v1385_v34  ;;  %v1402_v56 = vadd.f32 %v1395_v33, %v1386_v36  ;;  %v1403_v63 = vadd.f32 %v1395_v33, %v1387_v40  ;;  %v1404_v0 = vadd.f32 %v1395_v33, %v1388_v20 }
 0x5d3   : > { %v1413_v6 = vmul.f32 %v3840_v12, %v1405_v52  ;;  %v1414_v7 = vmul.f32 %v3850_v16, %v1406_v51  ;;  %v1415_v8 = vmul.f32 %v3856_v17, %v1407_v50  ;;  %v1416_v9 = vmul.f32 %v3859_v18, %v1408_v49 }
 0x5d4   : > { %v1409_v17 = vmul.f32 %v3864_v19, %v1401_v62  ;;  %v1410_v18 = vmul.f32 %v3872_v22, %v1402_v56  ;;  %v1411_v49 = vmul.f32 %v3877_v23, %v1403_v63  ;;  %v1412_v50 = vmul.f32 %v3880_v24, %v1404_v0 }
 0x5d5   : > { %v1427_v46 = vpop.permute.xlu1 %1426  ;;  %v1431_v61 = vpop.permute.xlu0 %1430  ;;  %v1421_v15 = vadd.f32 %v1413_v6, %v1373_v39  ;;  %v1422_v28 = vadd.f32 %v1414_v7, %v1374_v38  ;;  %v1423_v32 = vadd.f32 %v1415_v8, %v1375_v37  ;;  %v1424_v33 = vadd.f32 %v1416_v9, %v1376_v21 }
 0x5d6   : > { %v1433_v10 = vmul.f32 %v1427_v46, %v3911_v35  ;;  %v1434_v11 = vmul.f32 %v1427_v46, %v3929_v41  ;;  %v1435_v13 = vmul.f32 %v1427_v46, %v3932_v42  ;;  %v1436_v14 = vmul.f32 %v1427_v46, %v3955_v47 }
 0x5d7   : > { %v1437_v2 = vmul.f32 %v1431_v61, %v3958_v48  ;;  %v1438_v3 = vmul.f32 %v1431_v61, %v3981_v53  ;;  %v1439_v12 = vmul.f32 %v1431_v61, %v3984_v54  ;;  %v1440_v16 = vmul.f32 %v1431_v61, %v3987_v55 }
 0x5d8   : > { %v1417_v61 = vadd.f32 %v1409_v17, %v1369_v31  ;;  %v1418_v22 = vadd.f32 %v1410_v18, %v1370_v45  ;;  %v1419_v62 = vadd.f32 %v1411_v49, %v1371_v44  ;;  %v1420_v23 = vadd.f32 %v1412_v50, %v1372_v43  ;;  %v4376_v43 = vld [vmem:[#allocation47_spill] sm:$0xff]  ;;  %v4377_v44 = vld [vmem:[#allocation48_spill] sm:$0xff]  ;;  %v4378_v31 = vld [vmem:[#allocation49_spill] sm:$0xff] }
 0x5d9   : > { %v4380_v17 = vld [vmem:[#allocation51_spill] sm:$0xff]  ;;  %v4381_v18 = vld [vmem:[#allocation52_spill] sm:$0xff] }
 0x5da   : > { %v1443_v1 = vpop.permute.xlu1 %1442  ;;  %v1475_v5 = vpop.permute.xlu0 %1474 }
 0x5db   : > { %v1449_v51 = vadd.f32 %v1443_v1, %v1433_v10  ;;  %v1450_v52 = vadd.f32 %v1443_v1, %v1434_v11  ;;  %v1451_v46 = vadd.f32 %v1443_v1, %v1435_v13  ;;  %v1452_v4 = vadd.f32 %v1443_v1, %v1436_v14 }
 0x5dc   : > { %v1481_v37 = vmul.f32 %v1475_v5, %v3911_v35  ;;  %v1482_v38 = vmul.f32 %v1475_v5, %v3929_v41 }
 0x5dd   : > { %v1457_v24 = vmul.f32 %v3884_v25, %v1449_v51  ;;  %v1458_v56 = vmul.f32 %v3887_v26, %v1450_v52  ;;  %v1459_v63 = vmul.f32 %v3890_v27, %v1451_v46  ;;  %v1460_v39 = vmul.f32 %v3893_v29, %v1452_v4 }
 0x5de   : > { %v1447_v34 = vpop.permute.xlu1 %1446  ;;  %v1483_v25 = vmul.f32 %v1475_v5, %v3932_v42  ;;  %v1484_v26 = vmul.f32 %v1475_v5, %v3955_v47 }
 0x5df   : > { %v1453_v36 = vadd.f32 %v1447_v34, %v1437_v2  ;;  %v1454_v40 = vadd.f32 %v1447_v34, %v1438_v3  ;;  %v1455_v20 = vadd.f32 %v1447_v34, %v1439_v12  ;;  %v1456_v19 = vadd.f32 %v1447_v34, %v1440_v16  ;;  %v1495_v6 = vpop.permute.xlu0 %1494  ;;  %v4379_v16 = vld [vmem:[#allocation50_spill] sm:$0xff] }
 0x5e0   : > { %v1465_v8 = vadd.f32 %v1457_v24, %v1417_v61  ;;  %v1466_v47 = vadd.f32 %v1458_v56, %v1418_v22  ;;  %v1467_v9 = vadd.f32 %v1459_v63, %v1419_v62  ;;  %v4386_v61 = vld [vmem:[#allocation57_spill] sm:$0xff]  ;;  %v1233_v62 = vld [vmem:[%s3771_s17 + $0x20] sm:$0xff] }
 0x5e1   : > { %v1461_v27 = vmul.f32 %v3899_v30, %v1453_v36  ;;  %v1462_v29 = vmul.f32 %v4376_v43, %v1454_v40  ;;  %v1463_v45 = vmul.f32 %v4377_v44, %v1455_v20  ;;  %v1464_v21 = vmul.f32 %v4378_v31, %v1456_v19  ;;  %v4384_v36 = vld [vmem:[#allocation55_spill] sm:$0xff]  ;;  %v4385_v20 = vld [vmem:[#allocation56_spill] sm:$0xff]  ;;  %v1236_v43 = vld [vmem:[%s3771_s17 + $0x38] sm:$0xff] }
 0x5e2   : > { %v1468_v30 = vadd.f32 %v1460_v39, %v1420_v23  ;;  %v1234_v23 = vld [vmem:[%s3771_s17 + $0x28] sm:$0xff] }
 0x5e3   : > { %v1479_v0 = vpop.permute.xlu1 %1478  ;;  %v1469_v1 = vadd.f32 %v1461_v27, %v1421_v15  ;;  %v1470_v2 = vadd.f32 %v1462_v29, %v1422_v28  ;;  %v1471_v3 = vadd.f32 %v1463_v45, %v1423_v32  ;;  %v1472_v12 = vadd.f32 %v1464_v21, %v1424_v33  ;;  %v4383_v33 = vld [vmem:[#allocation54_spill] sm:$0xff] }
 0x5e4   : > { %v1485_v7 = vmul.f32 %v1479_v0, %v3958_v48  ;;  %v1486_v35 = vmul.f32 %v1479_v0, %v3981_v53  ;;  %v1487_v41 = vmul.f32 %v1479_v0, %v3984_v54  ;;  %v1488_v42 = vmul.f32 %v1479_v0, %v3987_v55  ;;  %v4382_v55 = vld [vmem:[#allocation53_spill] sm:$0xff] }
 0x5e6   : > { %v1501_v10 = vadd.f32 %v1495_v6, %v1485_v7  ;;  %v1502_v11 = vadd.f32 %v1495_v6, %v1486_v35  ;;  %v1503_v13 = vadd.f32 %v1495_v6, %v1487_v41  ;;  %v1504_v14 = vadd.f32 %v1495_v6, %v1488_v42  ;;  %v1229_v35 = vld [vmem:[%s3771_s17] sm:$0xff]  ;;  %v1230_v41 = vld [vmem:[%s3771_s17 + $0x8] sm:$0xff] }
 0x5e8   : > { %v1509_v48 = vmul.f32 %v4379_v16, %v1501_v10  ;;  %v1510_v53 = vmul.f32 %v4380_v17, %v1502_v11  ;;  %v1511_v54 = vmul.f32 %v4381_v18, %v1503_v13  ;;  %v1512_v49 = vmul.f32 %v4382_v55, %v1504_v14  ;;  %v1491_v50 = vpop.permute.xlu1 %1490  ;;  %v1232_v10 = vld [vmem:[%s3771_s17 + $0x18] sm:$0xff] }
 0x5e9   : > { %v1497_v51 = vadd.f32 %v1491_v50, %v1481_v37  ;;  %v1498_v52 = vadd.f32 %v1491_v50, %v1482_v38  ;;  %v1499_v46 = vadd.f32 %v1491_v50, %v1483_v25  ;;  %v1500_v4 = vadd.f32 %v1491_v50, %v1484_v26  ;;  %v1235_v37 = vld [vmem:[%s3771_s17 + $0x30] sm:$0xff] }
 0x5ea   : > { %v1517_v5 = vadd.f32 %v1509_v48, %v1469_v1  ;;  %v1518_v15 = vadd.f32 %v1510_v53, %v1470_v2  ;;  %v1519_v28 = vadd.f32 %v1511_v54, %v1471_v3  ;;  %v1520_v32 = vadd.f32 %v1512_v49, %v1472_v12 }
 0x5eb   : > { %v1505_v34 = vmul.f32 %v4383_v33, %v1497_v51  ;;  %v1506_v40 = vmul.f32 %v4384_v36, %v1498_v52  ;;  %v1507_v19 = vmul.f32 %v4385_v20, %v1499_v46  ;;  %v1508_v22 = vmul.f32 %v4386_v61, %v1500_v4  ;;  %v1561_v46 = vld [vmem:[#allocation3 + $0x8] sm:$0xff]  ;;  %v1637_v20 = vld [vmem:[#allocation5] sm:$0xff] }
 0x5ec   : > { %v4073_v24 = vsel %vm1532_vm1, %v1517_v5, -inf  ;;  %v4077_v56 = vsel %vm1533_vm2, %v1518_v15, -inf  ;;  %v4081_v63 = vsel %vm1534_vm3, %v1519_v28, -inf  ;;  %v4085_v39 = vsel %vm1535_vm4, %v1520_v32, -inf }
 0x5ed   : > { %v1567_v38 = vmax.f32 %v4073_v24, %v4081_v63  ;;  %v1568_v25 = vmax.f32 %v4077_v56, %v4085_v39  ;;  %v1513_v26 = vadd.f32 %v1505_v34, %v1465_v8  ;;  %v1514_v27 = vadd.f32 %v1506_v40, %v1466_v47 }
 0x5ee   : > { %v1515_v29 = vadd.f32 %v1507_v19, %v1467_v9  ;;  %v1516_v44 = vadd.f32 %v1508_v22, %v1468_v30  ;;  %v1548_v45 = vadd.f32 %v1517_v5, %v1233_v62  ;;  %v1549_v31 = vadd.f32 %v1518_v15, %v1234_v23  ;;  %v1231_v30 = vld [vmem:[%s3771_s17 + $0x10] sm:$0xff] }
 0x5ef   : > { %v1569_v21 = vmax.f32 %v1567_v38, %v1568_v25  ;;  %v4095_v0 = vsel %vm1532_vm1, %v1513_v26, -inf  ;;  %v4099_v6 = vsel %vm1533_vm2, %v1514_v27, -inf  ;;  %v1550_v7 = vadd.f32 %v1519_v28, %v1235_v37  ;;  %v1638_v28 = vld [vmem:[#allocation5 + $0x8] sm:$0xff] }
 0x5f0   : > { %v4105_v42 = vsel %vm1534_vm3, %v1515_v29, -inf  ;;  %v4109_v8 = vsel %vm1535_vm4, %v1516_v44, -inf  ;;  %v1551_v47 = vadd.f32 %v1520_v32, %v1236_v43  ;;  %v4113_v9 = vsel %vm1532_vm1, %v1548_v45, -inf }
 0x5f1   : > { %1570 = vmax.xlane.f32.xlu0 %v1569_v21  ;;  %v1562_v11 = vmax.f32 %v4095_v0, %v4105_v42  ;;  %v1563_v13 = vmax.f32 %v4099_v6, %v4109_v8  ;;  %v4123_v14 = vsel %vm1533_vm2, %v1549_v31, -inf  ;;  %v4127_v1 = vsel %vm1534_vm3, %v1550_v7, -inf }
 0x5f2   : > { %v4131_v2 = vsel %vm1535_vm4, %v1551_v47, -inf  ;;  %v1644_v3 = vmax.f32 %v4113_v9, %v4127_v1  ;;  %v1544_v12 = vadd.f32 %v1513_v26, %v1229_v35  ;;  %v1545_v16 = vadd.f32 %v1514_v27, %v1230_v41 }
 0x5f3   : > { %v1564_v48 = vmax.f32 %v1562_v11, %v1563_v13  ;;  %v1645_v17 = vmax.f32 %v4123_v14, %v4131_v2  ;;  %v1546_v53 = vadd.f32 %v1515_v29, %v1231_v30  ;;  %v1547_v18 = vadd.f32 %v1516_v44, %v1232_v10 }
 0x5f4   : > { %v4139_v54 = vsel %vm1532_vm1, %v1544_v12, -inf  ;;  %v4143_v55 = vsel %vm1533_vm2, %v1545_v16, -inf }
 0x5f5   : > { %1565 = vmax.xlane.f32.xlu1 %v1564_v48  ;;  %v1646_v49 = vmax.f32 %v1644_v3, %v1645_v17  ;;  %v4147_v50 = vsel %vm1534_vm3, %v1546_v53, -inf  ;;  %v4151_v51 = vsel %vm1535_vm4, %v1547_v18, -inf }
 0x5f6   : > { %v1639_v52 = vmax.f32 %v4139_v54, %v4147_v50  ;;  %v1640_v57 = vmax.f32 %v4143_v55, %v4151_v51 }
 0x5f7   : > { %1647 = vmax.xlane.f32.xlu0 %v1646_v49 }
 0x5f8   : > { %v1641_v59 = vmax.f32 %v1639_v52, %v1640_v57 }
 0x5fa   : > { %1642 = vmax.xlane.f32.xlu1 %v1641_v59 }
 0x67e   : > { %v1571_v4 = vpop.xlane.xlu0 %1570 }
 0x67f   : > { %v1573_v5 = vmax.f32 %v1561_v46, %v1571_v4 }
 0x681   : > { %v1575_v15 = vmax.f32 %v1573_v5, -1e+30  ;;  %1636 = vst.msk [vmem:[#allocation3 + $0x8] sm:$0xff] %vm1632_vm5, %v1573_v5 }
 0x682   : > { %v1566_v58 = vpop.xlane.xlu1 %1565 }
 0x683   : > { %v4158_v32 = vsub.f32 %v1561_v46, %v1575_v15  ;;  %v1572_v33 = vmax.f32 %v1560_v60, %v1566_v58  ;;  %1593 = vperm.xlu0 %2630, %v1575_v15  }
 0x684   : > { %v1648_v34 = vpop.xlane.xlu0 %1647 }
 0x685   : > { %v1574_v36 = vmax.f32 %v1572_v33, -1e+30  ;;  %1635 = vst.msk [vmem:[#allocation3] sm:$0xff] %vm1632_vm5, %v1572_v33  ;;  %v1650_v40 = vmax.f32 %v1638_v28, %v1648_v34 }
 0x687   : > { %v4161_v19 = vsub.f32 %v1560_v60, %v1574_v36  ;;  %v1652_v61 = vmax.f32 %v1650_v40, -1e+30  ;;  %1712 = vst.msk [vmem:[#allocation5 + $0x8] sm:$0xff] %vm1632_vm5, %v1650_v40  ;;  %v1643_v22 = vpop.xlane.xlu1 %1642  ;;  %1588 = vperm.xlu1 %2629, %v1574_v36  }
 0x688   : > { %v1649_v62 = vmax.f32 %v1637_v20, %v1643_v22 }
 0x689   : > { %v4164_v23 = vsub.f32 %v1638_v28, %v1652_v61 }
 0x68a   : > { %v1651_v37 = vmax.f32 %v1649_v62, -1e+30  ;;  %1711 = vst.msk [vmem:[#allocation5] sm:$0xff] %vm1632_vm5, %v1649_v62 }
 0x68c   : > { %v4167_v38 = vsub.f32 %v1637_v20, %v1651_v37  ;;  %1665 = vperm.xlu1 %2629, %v1651_v37  }
 0x690   : > { %1670 = vperm.xlu1 %2629, %v1652_v61  }
 0x702   : > { %v1594_v25 = vpop.permute.xlu0 %1593 }
 0x703   : > { %v1600_v26 = vsub.f32 %v4073_v24, %v1594_v25  ;;  %v1601_v27 = vsub.f32 %v4077_v56, %v1594_v25  ;;  %v1602_v43 = vsub.f32 %v4081_v63, %v1594_v25  ;;  %v1603_v29 = vsub.f32 %v4085_v39, %v1594_v25 }
 0x705   : > { %v1612_v44 = vmul.f32 1.442695, %v1600_v26  ;;  %v1614_v45 = vmul.f32 1.442695, %v1601_v27  ;;  %v1616_v31 = vmul.f32 1.442695, %v1602_v43 }
 0x706   : > { %v1618_v21 = vmul.f32 1.442695, %v1603_v29  ;;  %v1589_v7 = vpop.permute.xlu1 %1588  ;;  %v1580_v29 = vmul.f32 1.442695, %v4158_v32 }
 0x707   : > { %2631 = vpow2.f32 %v1612_v44  ;;  %v1596_v35 = vsub.f32 %v4095_v0, %v1589_v7  ;;  %v1597_v41 = vsub.f32 %v4099_v6, %v1589_v7  ;;  %v1598_v47 = vsub.f32 %v4105_v42, %v1589_v7 }
 0x708   : > { %2633 = vpow2.f32 %v1614_v45  ;;  %v1599_v24 = vsub.f32 %v4109_v8, %v1589_v7  ;;  %v1578_v44 = vmul.f32 1.442695, %v4161_v19  ;;  %v1655_v45 = vmul.f32 1.442695, %v4167_v38  ;;  %v1583_v7 = vld [vmem:[#allocation4 + $0x8] sm:$0xff] }
 0x709   : > { %2635 = vpow2.f32 %v1616_v31  ;;  %v1604_v56 = vmul.f32 1.442695, %v1596_v35  ;;  %v1606_v63 = vmul.f32 1.442695, %v1597_v41  ;;  %v1608_v39 = vmul.f32 1.442695, %v1598_v47 }
 0x70a   : > { %2637 = vpow2.f32 %v1618_v21  ;;  %v1610_v30 = vmul.f32 1.442695, %v1599_v24  ;;  %v1657_v31 = vmul.f32 1.442695, %v4164_v23  ;;  %v1582_v24 = vld [vmem:[#allocation4] sm:$0xff] }
 0x70b   : > { %2639 = vpow2.f32 %v1604_v56  ;;  %v1666_v10 = vpop.permute.xlu1 %1665 }
 0x70c   : > { %2641 = vpow2.f32 %v1606_v63  ;;  %v1673_v11 = vsub.f32 %v4139_v54, %v1666_v10  ;;  %v1674_v0 = vsub.f32 %v4143_v55, %v1666_v10  ;;  %v1675_v6 = vsub.f32 %v4147_v50, %v1666_v10 }
 0x70d   : > { %v1676_v42 = vsub.f32 %v4151_v51, %v1666_v10  ;;  %2643 = vpow2.f32 %v1608_v39 }
 0x70e   : > { %v1681_v13 = vmul.f32 1.442695, %v1673_v11  ;;  %v1683_v8 = vmul.f32 1.442695, %v1674_v0  ;;  %v1685_v3 = vmul.f32 1.442695, %v1675_v6  ;;  %2645 = vpow2.f32 %v1610_v30 }
 0x70f   : > { %v1687_v12 = vmul.f32 1.442695, %v1676_v42  ;;  %v1671_v16 = vpop.permute.xlu1 %1670  ;;  %v1659_v30 = vld [vmem:[#allocation6] sm:$0xff]  ;;  %v1660_v11 = vld [vmem:[#allocation6 + $0x8] sm:$0xff] }
 0x710   : > { %2647 = vpow2.f32 %v1681_v13  ;;  %v1677_v48 = vsub.f32 %v4113_v9, %v1671_v16  ;;  %v1678_v17 = vsub.f32 %v4123_v14, %v1671_v16  ;;  %v1679_v53 = vsub.f32 %v4127_v1, %v1671_v16 }
 0x711   : > { %v2632_v18 = vpop.eup %2631  ;;  %2649 = vpow2.f32 %v1683_v8  ;;  %v1680_v54 = vsub.f32 %v4131_v2, %v1671_v16 }
 0x712   : > { %v2634_v55 = vpop.eup %2633  ;;  %2651 = vpow2.f32 %v1685_v3  ;;  %v1689_v49 = vmul.f32 1.442695, %v1677_v48  ;;  %v1691_v50 = vmul.f32 1.442695, %v1678_v17  ;;  %v1693_v52 = vmul.f32 1.442695, %v1679_v53 }
 0x713   : > { %v2636_v51 = vpop.eup %2635  ;;  %2653 = vpow2.f32 %v1687_v12  ;;  %v1625_v57 = vadd.f32 %v2634_v55, %v2632_v18  ;;  %v1695_v9 = vmul.f32 1.442695, %v1680_v54  ;;  %v1741_v48 = vld [vmem:[#allocation2] sm:$0xff] (!%p2088_p0)  ;;  %v1742_v17 = vld [vmem:[#allocation2 + $0x8] sm:$0xff] (!%p2088_p0)  ;;  %v1717_v18 = vld [vmem:[#allocation3] sm:$0xff] (!%p2088_p0) }
 0x714   : > { %v2638_v59 = vpop.eup %2637  ;;  %2655 = vpow2.f32 %v1689_v49  ;;  %1743 = vst [vmem:[#allocation29] sm:$0xff] (!%p2088_p0), %v1741_v48  ;;  %1744 = vst [vmem:[#allocation29 + $0x8] sm:$0xff] (!%p2088_p0), %v1742_v17  ;;  %v1727_v49 = vld [vmem:[#allocation5] sm:$0xff] (!%p2088_p0) }
 0x715   : > { %v2640_v46 = vpop.eup %2639  ;;  %2657 = vpow2.f32 %v1691_v50  ;;  %v1626_v14 = vadd.f32 %v2636_v51, %v1625_v57 }
 0x716   : > { %v2642_v4 = vpop.eup %2641  ;;  %2659 = vpow2.f32 %v1693_v52  ;;  %v1718_v52 = vld [vmem:[#allocation3 + $0x8] sm:$0xff] (!%p2088_p0) }
 0x717   : > { %v1627_v1 = vadd.f32 %v2638_v59, %v1626_v14  ;;  %v1620_v5 = vadd.f32 %v2642_v4, %v2640_v46  ;;  %v2644_v60 = vpop.eup %2643  ;;  %2661 = vpow2.f32 %v1695_v9  ;;  %v1728_v9 = vld [vmem:[#allocation5 + $0x8] sm:$0xff] (!%p2088_p0) }
 0x718   : > { %v2646_v2 = vpop.eup %2645  ;;  %2663 = vpow2.f32 %v1580_v29 }
 0x719   : > { %1628 = vadd.xlane.f32.xlu0 %v1627_v1  ;;  %v1621_v15 = vadd.f32 %v2644_v60, %v1620_v5  ;;  %2665 = vpow2.f32 %v1578_v44 }
 0x71a   : > { %v2648_v58 = vpop.eup %2647  ;;  %2667 = vpow2.f32 %v1655_v45 }
 0x71b   : > { %v2650_v28 = vpop.eup %2649  ;;  %v1622_v33 = vadd.f32 %v2646_v2, %v1621_v15  ;;  %2669 = vpow2.f32 %v1657_v31 }
 0x71c   : > { %v2652_v34 = vpop.eup %2651  ;;  %v1697_v36 = vadd.f32 %v2650_v28, %v2648_v58 }
 0x71d   : > { %v2654_v40 = vpop.eup %2653  ;;  %1623 = vadd.xlane.f32.xlu1 %v1622_v33 }
 0x71e   : > { %v2656_v20 = vpop.eup %2655  ;;  %v1698_v61 = vadd.f32 %v2652_v34, %v1697_v36 }
 0x71f   : > { %v2658_v22 = vpop.eup %2657 }
 0x720   : > { %v1699_v62 = vadd.f32 %v2654_v40, %v1698_v61  ;;  %v1702_v37 = vadd.f32 %v2658_v22, %v2656_v20  ;;  %v2660_v25 = vpop.eup %2659 }
 0x721   : > { %v2662_v27 = vpop.eup %2661 }
 0x722   : > { %1700 = vadd.xlane.f32.xlu1 %v1699_v62  ;;  %v1703_v26 = vadd.f32 %v2660_v25, %v1702_v37  ;;  %v2664_v21 = vpop.eup %2663 }
 0x723   : > { %v1585_v35 = vmul.f32 %v2664_v21, %v1583_v7  ;;  %v2666_v41 = vpop.eup %2665 }
 0x724   : > { %v1704_v43 = vadd.f32 %v2662_v27, %v1703_v26  ;;  %v1584_v32 = vmul.f32 %v2666_v41, %v1582_v24  ;;  %v2668_v39 = vpop.eup %2667 }
 0x725   : > { %v1661_v38 = vmul.f32 %v2668_v39, %v1659_v30  ;;  %v2670_v23 = vpop.eup %2669 }
 0x726   : > { %1705 = vadd.xlane.f32.xlu1 %v1704_v43  ;;  %v1662_v6 = vmul.f32 %v2670_v23, %v1660_v11 }
 0x7a6   : > { %v1629_v47 = vpop.xlane.xlu0 %1628 }
 0x7a7   : > { %v1631_v56 = vadd.f32 %v1629_v47, %v1585_v35 }
 0x7a9   : > { %1634 = vst.msk [vmem:[#allocation4 + $0x8] sm:$0xff] %vm1632_vm5, %v1631_v56 }
 0x7aa   : > { %v1624_v63 = vpop.xlane.xlu1 %1623 }
 0x7ab   : > { %v1630_v19 = vadd.f32 %v1624_v63, %v1584_v32 }
 0x7ad   : > { %1633 = vst.msk [vmem:[#allocation4] sm:$0xff] %vm1632_vm5, %v1630_v19 }
 0x7af   : > { %v1701_v10 = vpop.xlane.xlu1 %1700 }
 0x7b0   : > { %v1707_v0 = vadd.f32 %v1701_v10, %v1661_v38  ;;  %1716 = sbr.rel (%p2088_p0) target bundleno = 2000 (0x7d0), region = 132  ;;  %v1720_v12 = vld [vmem:[#allocation4 + $0x8] sm:$0xff] (!%p2088_p0) }
 0x7b2   : > { %1709 = vst.msk [vmem:[#allocation6] sm:$0xff] %vm1632_vm5, %v1707_v0 }
 0x7b3   : > { %v1706_v42 = vpop.xlane.xlu1 %1705 }
 0x7b4   : > { %v1708_v13 = vadd.f32 %v1706_v42, %v1662_v6  ;;  %v1719_v8 = vld [vmem:[#allocation4] sm:$0xff] (!%p2088_p0) }
 0x7b5   : > { %2671 = vlog2.f32 (!%p2088_p0), %v1719_v8 }
 0x7b6   : > { %1710 = vst.msk [vmem:[#allocation6 + $0x8] sm:$0xff] %vm1632_vm5, %v1708_v13 }
 0x7b9   : > { %v1729_v3 = vld [vmem:[#allocation6] sm:$0xff] }
 0x7ba   : > { %2673 = vlog2.f32 %v1729_v3 }
 0x7bb   : > { %2675 = vlog2.f32 %v1720_v12 }
 0x7bd   : > { %v1730_v16 = vld [vmem:[#allocation6 + $0x8] sm:$0xff] }
 0x7be   : > { %2677 = vlog2.f32 %v1730_v16 }
 0x7bf   : > { %v2672_v53 = vpop.eup %2671 }
 0x7c0   : > { %v1722_v55 = vmul.f32 0.6931472, %v2672_v53 }
 0x7c2   : > { %v1725_v59 = vadd.f32 %v1722_v55, %v1717_v18 }
 0x7c4   : > { %v2674_v54 = vpop.eup %2673 }
 0x7c5   : > { %v2676_v50 = vpop.eup %2675  ;;  %v1732_v51 = vmul.f32 0.6931472, %v2674_v54 }
 0x7c6   : > { %v1724_v46 = vmul.f32 0.6931472, %v2676_v50 }
 0x7c7   : > { %v1735_v14 = vadd.f32 %v1732_v51, %v1727_v49 }
 0x7c8   : > { %v2678_v57 = vpop.eup %2677  ;;  %v1726_v1 = vadd.f32 %v1724_v46, %v1718_v52 }
 0x7c9   : > { %v1734_v4 = vmul.f32 0.6931472, %v2678_v57  ;;  %v1737_v5 = vsub.f32 %v1735_v14, %v1725_v59 }
 0x7cb   : > { %v1736_v60 = vadd.f32 %v1734_v4, %v1728_v9  ;;  %1739 = vst.msk [vmem:[#allocation28] sm:$0xff] %vm1632_vm5, %v1737_v5 }
 0x7cd   : > { %v1738_v2 = vsub.f32 %v1736_v60, %v1726_v1 }
 0x7cf   : > { %1740 = vst.msk [vmem:[#allocation28 + $0x8] sm:$0xff] %vm1632_vm5, %v1738_v2 }
 0x7d0 PF: > { %p2536_p10 = scmp.eq.s32.totalorder %s3327_s21, 1  ;;  %s3217_s27 = smov [#allocation28]  }
 0x7d1   : > { %s1754_s16 = sshll.u32 %s3217_s27, 4  ;;  %s1755_s16 = int_to_ptr.vmem [resolvable:$true] %s1754_s16 }
 0x7d2   : > { %s3051_s29 = scalar_lea.vmem %s1755_s16, 256  ;;  %p3058_p3 = scmp.lt.s32.totalorder %s1755_s16, %s1755_s16 }
 0x7d3   : > { %p3052_p1 = scmp.ne.s32.totalorder %s1755_s16, %s3051_s29  ;;  %p3059_p2 = scmp.lt.s32.totalorder %s3051_s29, %s3051_s29 }
 0x7d5   : > { %p3053_p5 = pnand %p3052_p1, %p2536_p10  ;;  %p3060_p9 = por %p3059_p2, %p3058_p3 }
 0x7d7   : > { %p3054_p7 = pneg %p3053_p5 }
 0x7d9   : > { %p3061_p4 = pnand %p3060_p9, %p3054_p7 }
 0x7db   : > { %3064 = shalt.err (!%p3061_p4)
}
 0x7dc   : > { %s4387_s19 = sld [smem:[#allocation68_spill]] }
 0x7e2   : > { %s3065_s10 = scalar_lea.hbm %s4387_s19, 256 }
 0x7e3   : > { %p3066_p8 = scmp.ne.s32.totalorder %s4387_s19, %s3065_s10  ;;  %p3071_p11 = scmp.lt.u32.totalorder %s3065_s10, %s4387_s19 }
 0x7e5   : > { %p3067_p6 = pnand %p3066_p8, %p2536_p10 }
 0x7e7   : > { %p3068_p12 = pneg %p3067_p6 }
 0x7e9   : > { %p3073_p13 = pnand %p3071_p11, %p3068_p12 }
 0x7eb   : > { %3076 = shalt.err (!%p3073_p13)
}
 0x7ec   : > { %s3218_s12 = smov 128   ;;  %s3219_s8 = smov 8  }
 0x7ed   : > { %2469 = dma.vmem_to_hbm [thread:$0]  (%p2536_p10), %s1755_s16, 256, %s4387_s19, [#allocation9], %s3218_s12, %s3218_s12, %s3219_s8  }
 0x7ee   : > { %s3220_s15 = smov [#allocation29]  }
 0x7ef   : > { %s1770_s25 = sshll.u32 %s3220_s15, 4  ;;  %s1771_s25 = int_to_ptr.vmem [resolvable:$true] %s1770_s25 }
 0x7f0   : > { %s3077_s20 = scalar_lea.vmem %s1771_s25, 256  ;;  %p3084_p7 = scmp.lt.s32.totalorder %s1771_s25, %s1771_s25 }
 0x7f1   : > { %p3078_p0 = scmp.ne.s32.totalorder %s1771_s25, %s3077_s20  ;;  %p3085_p3 = scmp.lt.s32.totalorder %s3077_s20, %s3077_s20 }
 0x7f3   : > { %p3079_p1 = pnand %p3078_p0, %p2536_p10  ;;  %p3086_p2 = por %p3085_p3, %p3084_p7 }
 0x7f5   : > { %p3080_p5 = pneg %p3079_p1 }
 0x7f7   : > { %p3087_p9 = pnand %p3086_p2, %p3080_p5 }
 0x7f9   : > { %3090 = shalt.err (!%p3087_p9)
}
 0x7fa   : > { %s4388_s28 = sld [smem:[#allocation69_spill]] }
 0x800   : > { %s3091_s7 = scalar_lea.hbm %s4388_s28, 256 }
 0x801   : > { %p3092_p4 = scmp.ne.s32.totalorder %s4388_s28, %s3091_s7  ;;  %p3097_p12 = scmp.lt.u32.totalorder %s3091_s7, %s4388_s28 }
 0x803   : > { %p3093_p8 = pnand %p3092_p4, %p2536_p10 }
 0x805   : > { %p3094_p6 = pneg %p3093_p8 }
 0x807   : > { %p3099_p11 = pnand %p3097_p12, %p3094_p6 }
 0x809   : > { %3102 = shalt.err (!%p3099_p11)
}
 0x80a   : > { %2471 = dma.vmem_to_hbm [thread:$0]  (%p2536_p10), %s1771_s25, 256, %s4388_s28, [#allocation30], %s3218_s12, %s3218_s12, %s3219_s8  }
 0x80b   : > { %3156 = dma.done.wait (%p2536_p10), [#allocation9], 256  }
 0x80c   : > { %3158 = vsyncadd (%p2536_p10), [#allocation9], 4294967040 }
 0x80d   : > { %3160 = dma.done.wait (%p2536_p10), [#allocation30], 256  }
 0x80e   : > { %3162 = vsyncadd (%p2536_p10), [#allocation30], 4294967040 }
 0x80f PF: > { %s4389_s1 = sld [smem:[#allocation43_spill]]  ;;  %s4390_s3 = sld [smem:[#allocation40_spill]] }
 0x810   : > { %s4391_s15 = sld [smem:[#allocation46_spill]]  ;;  %s4392_s16 = sld [smem:[#allocation42_spill]] }
 0x811   : > { %s4393_s17 = sld [smem:[#allocation45_spill]]  ;;  %s4394_s29 = smov %s3169_s30 }
 0x815   : > { %s38_s18 = sadd.s32 1, %s4389_s1   ;;  %s4395_s30 = smov %s4390_s3 }
 0x816   : > { %p35_p13 = scmp.ge.s32.totalorder %s38_s18, 4  }
 0x818   :  { %37 = sbr.rel (!%p35_p13) target bundleno = 26 (0x1a), region = 200 }
 0x81f   :  { %1790 = vsyncpa [#allocation8], 1 }
 0x820   :  { %1792 = vsyncpa [#allocation8 + $0x1], 1 }
 0x821   :  { %1793 = vsyncpa [#allocation11], 1 }
 0x822   :  { %1794 = vsyncpa [#allocation14], 1 }
 0x823   :  { %1795 = vsyncpa [#allocation17], 1 }
 0x824   :  { %1796 = vsyncpa [#allocation20], 1 }
 0x825   :  { %1797 = vsyncpa [#allocation23], 1 }
 0x826   :  { %1799 = vsyncpa [#allocation23 + $0x1], 1 }
 0x827   :  { %1800 = vsyncpa [#allocation26], 1 }
 0x828   :  { %1802 = vsyncpa [#allocation26 + $0x1], 1 }
 0x829   :  { %1803 = vsyncpa [#allocation9], 1 }
 0x82a   :  { %1805 = vsyncpa [#allocation9 + $0x1], 1 }
 0x82b   :  { %1806 = vsyncpa [#allocation30], 1 }

</bundles_post_ra>
